<compile_context>
chip_gen: v7x
topology: tpu7x:2x2x1
jax: 0.10.0
libtpu: 0.0.40
codegen_flags: <defaults>
</compile_context>

<pallas_src>
import jax
import jax.numpy as jnp
from jax.experimental import pallas as pl
from jax.experimental.pallas import tpu as pltpu

# ------------------------- problem sizes (small, deterministic) -------------------------
BATCH = 2
SEQ = 8
INPUT_SIZE = 32           # must equal HIDDEN for the PyTorch module's forward to type-check
HIDDEN = 32
NUM_LAYERS = 2
NUM_FC = 3


# --------------------------------- fused FC + LSTM kernel -------------------------------
def _star_encoder_kernel(x_ref, fcw_ref, fcb_ref, wih_ref, whh_ref, b_ref,
                         out_ref, hn_ref, cn_ref):
    # x_ref:   (B, S, D)        f32   batch-first input
    # fcw_ref: (NUM_FC, D, H)   f32   pre-transposed FC weights (y = x @ W^T + b)
    # fcb_ref: (NUM_FC, 1, H)   f32
    # wih_ref: (L, H, 4H)       f32   pre-transposed input->gates weights
    # whh_ref: (L, H, 4H)       f32   pre-transposed hidden->gates weights
    # b_ref:   (L, 1, 4H)       f32   b_ih + b_hh
    # out_ref: (B, S*H)         f32   last-layer hidden states, batch-first, lane-dense
    # hn_ref:  (L, B, H)        f32   final hidden state per layer
    # cn_ref:  (L, B, H)        f32   final cell state per layer
    B, S, D = x_ref.shape
    H = HIDDEN

    # ---- in-VMEM relayout to time-major flat rows: row index = t*B + b ----
    x = x_ref[...]
    flat = jnp.concatenate([x[:, t, :] for t in range(S)], axis=0)      # (S*B, D)

    # ---- fused FC stack (row-wise, order independent) ----
    for k in range(NUM_FC):
        flat = jnp.maximum(
            jnp.dot(flat, fcw_ref[k], preferred_element_type=jnp.float32) + fcb_ref[k],
            0.0)

    inp = flat                                                          # (S*B, H)
    outs = []

    # ---- multi-layer LSTM, fully unrolled (L and S are small & static) ----
    for l in range(NUM_LAYERS):
        wih = wih_ref[l]                                                # (H, 4H)
        whh = whh_ref[l]                                                # (H, 4H)
        bias = b_ref[l]                                                 # (1, 4H)

        # Hoisted input->gates matmul: one (S*B,H)x(H,4H) MXU op per layer.
        gx = jnp.dot(inp, wih, preferred_element_type=jnp.float32) + bias   # (S*B, 4H)

        h = jnp.zeros((B, H), jnp.float32)
        c = jnp.zeros((B, H), jnp.float32)
        outs = []
        for t in range(S):                                              # static unroll
            gates = gx[t * B:(t + 1) * B, :] + jnp.dot(
                h, whh, preferred_element_type=jnp.float32)             # (B, 4H)
            # PyTorch gate order: i, f, g, o. One sigmoid + one tanh pass over the
            # full (B, 4H) tile, then slice the activated results.
            sig = jax.nn.sigmoid(gates)
            tnh = jnp.tanh(gates)
            i_g = sig[:, 0 * H:1 * H]
            f_g = sig[:, 1 * H:2 * H]
            g_g = tnh[:, 2 * H:3 * H]
            o_g = sig[:, 3 * H:4 * H]
            c = f_g * c + i_g * g_g
            h = o_g * jnp.tanh(c)
            outs.append(h)

        hn_ref[l] = h.astype(hn_ref.dtype)      # final carry, not a scratch copy
        cn_ref[l] = c.astype(cn_ref.dtype)
        if l + 1 < NUM_LAYERS:
            inp = jnp.concatenate(outs, axis=0)                         # (S*B, H)

    # Batch-first, lane-dense output: column block t*H:(t+1)*H is timestep t.
    out_ref[...] = jnp.concatenate(outs, axis=1).astype(out_ref.dtype)  # (B, S*H)


# -------------------------------------- full module -------------------------------------
def _forward(x, fcw_t, fcb, wih_t, whh_t, bias):
    """x: (B, S, D) with pre-prepped params.  One fused pallas_call."""
    B, S, D = x.shape
    vmem = pl.BlockSpec(memory_space=pltpu.MemorySpace.VMEM)
    out2d, h_n, c_n = pl.pallas_call(
        _star_encoder_kernel,
        out_shape=(
            jax.ShapeDtypeStruct((B, S * HIDDEN), jnp.float32),
            jax.ShapeDtypeStruct((NUM_LAYERS, B, HIDDEN), jnp.float32),
            jax.ShapeDtypeStruct((NUM_LAYERS, B, HIDDEN), jnp.float32),
        ),
        in_specs=[vmem, vmem, vmem, vmem, vmem, vmem],
        out_specs=(vmem, vmem, vmem),
        # Gridless single invocation: total resident data is tiny (<100 KiB), and
        # adding grid steps would only add per-step overhead at this size.
        # TODO(synk): for large B on v7x, add a batch grid axis with
        # dimension_semantics=("parallel",) to engage the second TensorCore.
    )(x, fcw_t, fcb, wih_t, whh_t, bias)
    # (B, S*H) -> (B, S, H) is a contiguous minor-dim split: a free bitcast reshape.
    return out2d.reshape(B, S, HIDDEN), h_n, c_n


star_encoder_layer = jax.jit(_forward)


def prepare_params(fc_w, fc_b, w_ih, w_hh, b_ih, b_hh):
    """One-time parameter prep (done outside the jitted forward)."""
    return (
        jnp.transpose(fc_w, (0, 2, 1)),          # (NUM_FC, D, H)
        fc_b[:, None, :],                        # (NUM_FC, 1, H)
        jnp.transpose(w_ih, (0, 2, 1)),          # (L, H, 4H)
        jnp.transpose(w_hh, (0, 2, 1)),          # (L, H, 4H)
        (b_ih + b_hh)[:, None, :],               # (L, 1, 4H)
    )


# ------------------------------------- JAX reference ------------------------------------
def reference(x, fc_w, fc_b, w_ih, w_hh, b_ih, b_hh):
    h = x
    for k in range(NUM_FC):
        h = jnp.maximum(h @ fc_w[k].T + fc_b[k], 0.0)
    B, S, H = h.shape[0], h.shape[1], HIDDEN
    inp = h
    hs, cs = [], []
    for l in range(NUM_LAYERS):
        ht = jnp.zeros((B, H), jnp.float32)
        ct = jnp.zeros((B, H), jnp.float32)
        outs = []
        for t in range(S):
            gates = inp[:, t, :] @ w_ih[l].T + b_ih[l] + ht @ w_hh[l].T + b_hh[l]
            i_g = jax.nn.sigmoid(gates[:, :H])
            f_g = jax.nn.sigmoid(gates[:, H:2 * H])
            g_g = jnp.tanh(gates[:, 2 * H:3 * H])
            o_g = jax.nn.sigmoid(gates[:, 3 * H:])
            ct = f_g * ct + i_g * g_g
            ht = o_g * jnp.tanh(ct)
            outs.append(ht)
        inp = jnp.stack(outs, axis=1)
        hs.append(ht)
        cs.append(ct)
    return inp, jnp.stack(hs), jnp.stack(cs)


# ------------------------------------------ main -----------------------------------------
if __name__ == "__main__":
    key = jax.random.PRNGKey(0)
    keys = jax.random.split(key, 8)
    scale = 0.2

    x = jax.random.normal(keys[0], (BATCH, SEQ, INPUT_SIZE), jnp.float32)

    # nn.Linear(input_size, hidden_size) x NUM_FC  -> W: (H, D), b: (H,)
    fc_w = scale * jax.random.normal(keys[1], (NUM_FC, HIDDEN, INPUT_SIZE), jnp.float32)
    fc_b = scale * jax.random.normal(keys[2], (NUM_FC, HIDDEN), jnp.float32)

    # nn.LSTM(input_size, hidden_size, num_layers)  -> per layer:
    #   w_ih: (4H, H_in)  w_hh: (4H, H)  b_ih, b_hh: (4H,)     (H_in == H here)
    w_ih = scale * jax.random.normal(keys[3], (NUM_LAYERS, 4 * HIDDEN, HIDDEN), jnp.float32)
    w_hh = scale * jax.random.normal(keys[4], (NUM_LAYERS, 4 * HIDDEN, HIDDEN), jnp.float32)
    b_ih = scale * jax.random.normal(keys[5], (NUM_LAYERS, 4 * HIDDEN), jnp.float32)
    b_hh = scale * jax.random.normal(keys[6], (NUM_LAYERS, 4 * HIDDEN), jnp.float32)

    params = prepare_params(fc_w, fc_b, w_ih, w_hh, b_ih, b_hh)
    params = jax.block_until_ready(params)   # one-time prep, outside the measured path

    out, h_n, c_n = star_encoder_layer(x, *params)
    jax.block_until_ready((out, h_n, c_n))

    ref_out, ref_hn, ref_cn = reference(x, fc_w, fc_b, w_ih, w_hh, b_ih, b_hh)
    assert out.shape == (BATCH, SEQ, HIDDEN)
    assert h_n.shape == (NUM_LAYERS, BATCH, HIDDEN)
    assert c_n.shape == (NUM_LAYERS, BATCH, HIDDEN)
    assert jnp.allclose(out, ref_out, atol=1e-4, rtol=1e-4)
    assert jnp.allclose(h_n, ref_hn, atol=1e-4, rtol=1e-4)
    assert jnp.allclose(c_n, ref_cn, atol=1e-4, rtol=1e-4)

    print("KERNEL_OK")
</pallas_src>

<mosaic_0001>
module attributes {stable_mosaic.version = 11 : i64} {
  func.func @_star_encoder_kernel(%arg0: memref<2x8x32xf32, #tpu.memory_space<vmem>>, %arg1: memref<3x32x32xf32, #tpu.memory_space<vmem>>, %arg2: memref<3x1x32xf32, #tpu.memory_space<vmem>>, %arg3: memref<2x32x128xf32, #tpu.memory_space<vmem>>, %arg4: memref<2x32x128xf32, #tpu.memory_space<vmem>>, %arg5: memref<2x1x128xf32, #tpu.memory_space<vmem>>, %arg6: memref<2x256xf32, #tpu.memory_space<vmem>>, %arg7: memref<2x2x32xf32, #tpu.memory_space<vmem>>, %arg8: memref<2x2x32xf32, #tpu.memory_space<vmem>>) attributes {dimension_semantics = [], scalar_prefetch = 0 : i64, scratch_operands = 0 : i64, tpu.core_type = #tpu.core_type<tc>} {
    %c0 = arith.constant 0 : index
    %c0_0 = arith.constant 0 : index
    %c0_1 = arith.constant 0 : index
    %0 = vector.load %arg0[%c0, %c0_0, %c0_1] : memref<2x8x32xf32, #tpu.memory_space<vmem>>, vector<2x8x32xf32>
    %1 = vector.extract_strided_slice %0 {offsets = [0, 0, 0], sizes = [2, 1, 32], strides = [1, 1, 1]} : vector<2x8x32xf32> to vector<2x1x32xf32>
    %2 = vector.shape_cast %1 : vector<2x1x32xf32> to vector<2x32xf32>
    %3 = vector.extract_strided_slice %0 {offsets = [0, 1, 0], sizes = [2, 1, 32], strides = [1, 1, 1]} : vector<2x8x32xf32> to vector<2x1x32xf32>
    %4 = vector.shape_cast %3 : vector<2x1x32xf32> to vector<2x32xf32>
    %5 = vector.extract_strided_slice %0 {offsets = [0, 2, 0], sizes = [2, 1, 32], strides = [1, 1, 1]} : vector<2x8x32xf32> to vector<2x1x32xf32>
    %6 = vector.shape_cast %5 : vector<2x1x32xf32> to vector<2x32xf32>
    %7 = vector.extract_strided_slice %0 {offsets = [0, 3, 0], sizes = [2, 1, 32], strides = [1, 1, 1]} : vector<2x8x32xf32> to vector<2x1x32xf32>
    %8 = vector.shape_cast %7 : vector<2x1x32xf32> to vector<2x32xf32>
    %9 = vector.extract_strided_slice %0 {offsets = [0, 4, 0], sizes = [2, 1, 32], strides = [1, 1, 1]} : vector<2x8x32xf32> to vector<2x1x32xf32>
    %10 = vector.shape_cast %9 : vector<2x1x32xf32> to vector<2x32xf32>
    %11 = vector.extract_strided_slice %0 {offsets = [0, 5, 0], sizes = [2, 1, 32], strides = [1, 1, 1]} : vector<2x8x32xf32> to vector<2x1x32xf32>
    %12 = vector.shape_cast %11 : vector<2x1x32xf32> to vector<2x32xf32>
    %13 = vector.extract_strided_slice %0 {offsets = [0, 6, 0], sizes = [2, 1, 32], strides = [1, 1, 1]} : vector<2x8x32xf32> to vector<2x1x32xf32>
    %14 = vector.shape_cast %13 : vector<2x1x32xf32> to vector<2x32xf32>
    %15 = vector.extract_strided_slice %0 {offsets = [0, 7, 0], sizes = [2, 1, 32], strides = [1, 1, 1]} : vector<2x8x32xf32> to vector<2x1x32xf32>
    %16 = vector.shape_cast %15 : vector<2x1x32xf32> to vector<2x32xf32>
    %17 = tpu.concatenate %2, %4, %6, %8, %10, %12, %14, %16 in 0 : vector<2x32xf32>, vector<2x32xf32>, vector<2x32xf32>, vector<2x32xf32>, vector<2x32xf32>, vector<2x32xf32>, vector<2x32xf32>, vector<2x32xf32> -> vector<16x32xf32>
    %c0_2 = arith.constant 0 : index
    %c0_3 = arith.constant 0 : index
    %c0_4 = arith.constant 0 : index
    %18 = vector.load %arg1[%c0_2, %c0_3, %c0_4] : memref<3x32x32xf32, #tpu.memory_space<vmem>>, vector<1x32x32xf32>
    %19 = vector.shape_cast %18 : vector<1x32x32xf32> to vector<32x32xf32>
    %cst = arith.constant dense<0.000000e+00> : vector<16x32xf32>
    %20 = tpu.matmul %17, %19, %cst {dimension_numbers = #tpu.dot_dimension_numbers<[1], [0], [0], [1], [0, 0, 1, 1], [], []>} : vector<16x32xf32>, vector<32x32xf32>, vector<16x32xf32> -> vector<16x32xf32>
    %c0_5 = arith.constant 0 : index
    %c0_6 = arith.constant 0 : index
    %c0_7 = arith.constant 0 : index
    %21 = vector.load %arg2[%c0_5, %c0_6, %c0_7] : memref<3x1x32xf32, #tpu.memory_space<vmem>>, vector<1x1x32xf32>
    %22 = vector.shape_cast %21 : vector<1x1x32xf32> to vector<1x32xf32>
    %23 = vector.broadcast %22 : vector<1x32xf32> to vector<16x32xf32>
    %24 = arith.addf %20, %23 : vector<16x32xf32>
    %cst_8 = arith.constant 0.000000e+00 : f32
    %25 = vector.broadcast %cst_8 : f32 to vector<16x32xf32>
    %26 = arith.maximumf %24, %25 : vector<16x32xf32>
    %c1 = arith.constant 1 : index
    %c0_9 = arith.constant 0 : index
    %c0_10 = arith.constant 0 : index
    %27 = vector.load %arg1[%c1, %c0_9, %c0_10] : memref<3x32x32xf32, #tpu.memory_space<vmem>>, vector<1x32x32xf32>
    %28 = vector.shape_cast %27 : vector<1x32x32xf32> to vector<32x32xf32>
    %cst_11 = arith.constant dense<0.000000e+00> : vector<16x32xf32>
    %29 = tpu.matmul %26, %28, %cst_11 {dimension_numbers = #tpu.dot_dimension_numbers<[1], [0], [0], [1], [0, 0, 1, 1], [], []>} : vector<16x32xf32>, vector<32x32xf32>, vector<16x32xf32> -> vector<16x32xf32>
    %c1_12 = arith.constant 1 : index
    %c0_13 = arith.constant 0 : index
    %c0_14 = arith.constant 0 : index
    %30 = vector.load %arg2[%c1_12, %c0_13, %c0_14] : memref<3x1x32xf32, #tpu.memory_space<vmem>>, vector<1x1x32xf32>
    %31 = vector.shape_cast %30 : vector<1x1x32xf32> to vector<1x32xf32>
    %32 = vector.broadcast %31 : vector<1x32xf32> to vector<16x32xf32>
    %33 = arith.addf %29, %32 : vector<16x32xf32>
    %cst_15 = arith.constant 0.000000e+00 : f32
    %34 = vector.broadcast %cst_15 : f32 to vector<16x32xf32>
    %35 = arith.maximumf %33, %34 : vector<16x32xf32>
    %c2 = arith.constant 2 : index
    %c0_16 = arith.constant 0 : index
    %c0_17 = arith.constant 0 : index
    %36 = vector.load %arg1[%c2, %c0_16, %c0_17] : memref<3x32x32xf32, #tpu.memory_space<vmem>>, vector<1x32x32xf32>
    %37 = vector.shape_cast %36 : vector<1x32x32xf32> to vector<32x32xf32>
    %cst_18 = arith.constant dense<0.000000e+00> : vector<16x32xf32>
    %38 = tpu.matmul %35, %37, %cst_18 {dimension_numbers = #tpu.dot_dimension_numbers<[1], [0], [0], [1], [0, 0, 1, 1], [], []>} : vector<16x32xf32>, vector<32x32xf32>, vector<16x32xf32> -> vector<16x32xf32>
    %c2_19 = arith.constant 2 : index
    %c0_20 = arith.constant 0 : index
    %c0_21 = arith.constant 0 : index
    %39 = vector.load %arg2[%c2_19, %c0_20, %c0_21] : memref<3x1x32xf32, #tpu.memory_space<vmem>>, vector<1x1x32xf32>
    %40 = vector.shape_cast %39 : vector<1x1x32xf32> to vector<1x32xf32>
    %41 = vector.broadcast %40 : vector<1x32xf32> to vector<16x32xf32>
    %42 = arith.addf %38, %41 : vector<16x32xf32>
    %cst_22 = arith.constant 0.000000e+00 : f32
    %43 = vector.broadcast %cst_22 : f32 to vector<16x32xf32>
    %44 = arith.maximumf %42, %43 : vector<16x32xf32>
    %c0_23 = arith.constant 0 : index
    %c0_24 = arith.constant 0 : index
    %c0_25 = arith.constant 0 : index
    %45 = vector.load %arg3[%c0_23, %c0_24, %c0_25] : memref<2x32x128xf32, #tpu.memory_space<vmem>>, vector<1x32x128xf32>
    %46 = vector.shape_cast %45 : vector<1x32x128xf32> to vector<32x128xf32>
    %c0_26 = arith.constant 0 : index
    %c0_27 = arith.constant 0 : index
    %c0_28 = arith.constant 0 : index
    %47 = vector.load %arg4[%c0_26, %c0_27, %c0_28] : memref<2x32x128xf32, #tpu.memory_space<vmem>>, vector<1x32x128xf32>
    %48 = vector.shape_cast %47 : vector<1x32x128xf32> to vector<32x128xf32>
    %c0_29 = arith.constant 0 : index
    %c0_30 = arith.constant 0 : index
    %c0_31 = arith.constant 0 : index
    %49 = vector.load %arg5[%c0_29, %c0_30, %c0_31] : memref<2x1x128xf32, #tpu.memory_space<vmem>>, vector<1x1x128xf32>
    %50 = vector.shape_cast %49 : vector<1x1x128xf32> to vector<1x128xf32>
    %cst_32 = arith.constant dense<0.000000e+00> : vector<16x128xf32>
    %51 = tpu.matmul %44, %46, %cst_32 {dimension_numbers = #tpu.dot_dimension_numbers<[1], [0], [0], [1], [0, 0, 1, 1], [], []>} : vector<16x32xf32>, vector<32x128xf32>, vector<16x128xf32> -> vector<16x128xf32>
    %52 = vector.broadcast %50 : vector<1x128xf32> to vector<16x128xf32>
    %53 = arith.addf %51, %52 : vector<16x128xf32>
    %cst_33 = arith.constant 0.000000e+00 : f32
    %54 = vector.broadcast %cst_33 : f32 to vector<2x32xf32>
    %cst_34 = arith.constant 0.000000e+00 : f32
    %55 = vector.broadcast %cst_34 : f32 to vector<2x32xf32>
    %56 = vector.extract_strided_slice %53 {offsets = [0, 0], sizes = [2, 128], strides = [1, 1]} : vector<16x128xf32> to vector<2x128xf32>
    %cst_35 = arith.constant dense<0.000000e+00> : vector<2x128xf32>
    %57 = tpu.matmul %54, %48, %cst_35 {dimension_numbers = #tpu.dot_dimension_numbers<[1], [0], [0], [1], [0, 0, 1, 1], [], []>} : vector<2x32xf32>, vector<32x128xf32>, vector<2x128xf32> -> vector<2x128xf32>
    %58 = arith.addf %56, %57 : vector<2x128xf32>
    %59 = arith.negf %58 : vector<2x128xf32>
    %60 = math.exp %59 : vector<2x128xf32>
    %cst_36 = arith.constant 1.000000e+00 : f32
    %61 = vector.broadcast %cst_36 : f32 to vector<2x128xf32>
    %62 = arith.addf %61, %60 : vector<2x128xf32>
    %63 = arith.divf %61, %62 : vector<2x128xf32>
    %64 = math.tanh %58 : vector<2x128xf32>
    %65 = vector.extract_strided_slice %63 {offsets = [0, 0], sizes = [2, 32], strides = [1, 1]} : vector<2x128xf32> to vector<2x32xf32>
    %66 = vector.extract_strided_slice %63 {offsets = [0, 32], sizes = [2, 32], strides = [1, 1]} : vector<2x128xf32> to vector<2x32xf32>
    %67 = vector.extract_strided_slice %64 {offsets = [0, 64], sizes = [2, 32], strides = [1, 1]} : vector<2x128xf32> to vector<2x32xf32>
    %68 = vector.extract_strided_slice %63 {offsets = [0, 96], sizes = [2, 32], strides = [1, 1]} : vector<2x128xf32> to vector<2x32xf32>
    %69 = arith.mulf %66, %55 : vector<2x32xf32>
    %70 = arith.mulf %65, %67 : vector<2x32xf32>
    %71 = arith.addf %69, %70 : vector<2x32xf32>
    %72 = math.tanh %71 : vector<2x32xf32>
    %73 = arith.mulf %68, %72 : vector<2x32xf32>
    %74 = vector.extract_strided_slice %53 {offsets = [2, 0], sizes = [2, 128], strides = [1, 1]} : vector<16x128xf32> to vector<2x128xf32>
    %cst_37 = arith.constant dense<0.000000e+00> : vector<2x128xf32>
    %75 = tpu.matmul %73, %48, %cst_37 {dimension_numbers = #tpu.dot_dimension_numbers<[1], [0], [0], [1], [0, 0, 1, 1], [], []>} : vector<2x32xf32>, vector<32x128xf32>, vector<2x128xf32> -> vector<2x128xf32>
    %76 = arith.addf %74, %75 : vector<2x128xf32>
    %77 = arith.negf %76 : vector<2x128xf32>
    %78 = math.exp %77 : vector<2x128xf32>
    %cst_38 = arith.constant 1.000000e+00 : f32
    %79 = vector.broadcast %cst_38 : f32 to vector<2x128xf32>
    %80 = arith.addf %79, %78 : vector<2x128xf32>
    %81 = arith.divf %79, %80 : vector<2x128xf32>
    %82 = math.tanh %76 : vector<2x128xf32>
    %83 = vector.extract_strided_slice %81 {offsets = [0, 0], sizes = [2, 32], strides = [1, 1]} : vector<2x128xf32> to vector<2x32xf32>
    %84 = vector.extract_strided_slice %81 {offsets = [0, 32], sizes = [2, 32], strides = [1, 1]} : vector<2x128xf32> to vector<2x32xf32>
    %85 = vector.extract_strided_slice %82 {offsets = [0, 64], sizes = [2, 32], strides = [1, 1]} : vector<2x128xf32> to vector<2x32xf32>
    %86 = vector.extract_strided_slice %81 {offsets = [0, 96], sizes = [2, 32], strides = [1, 1]} : vector<2x128xf32> to vector<2x32xf32>
    %87 = arith.mulf %84, %71 : vector<2x32xf32>
    %88 = arith.mulf %83, %85 : vector<2x32xf32>
    %89 = arith.addf %87, %88 : vector<2x32xf32>
    %90 = math.tanh %89 : vector<2x32xf32>
    %91 = arith.mulf %86, %90 : vector<2x32xf32>
    %92 = vector.extract_strided_slice %53 {offsets = [4, 0], sizes = [2, 128], strides = [1, 1]} : vector<16x128xf32> to vector<2x128xf32>
    %cst_39 = arith.constant dense<0.000000e+00> : vector<2x128xf32>
    %93 = tpu.matmul %91, %48, %cst_39 {dimension_numbers = #tpu.dot_dimension_numbers<[1], [0], [0], [1], [0, 0, 1, 1], [], []>} : vector<2x32xf32>, vector<32x128xf32>, vector<2x128xf32> -> vector<2x128xf32>
    %94 = arith.addf %92, %93 : vector<2x128xf32>
    %95 = arith.negf %94 : vector<2x128xf32>
    %96 = math.exp %95 : vector<2x128xf32>
    %cst_40 = arith.constant 1.000000e+00 : f32
    %97 = vector.broadcast %cst_40 : f32 to vector<2x128xf32>
    %98 = arith.addf %97, %96 : vector<2x128xf32>
    %99 = arith.divf %97, %98 : vector<2x128xf32>
    %100 = math.tanh %94 : vector<2x128xf32>
    %101 = vector.extract_strided_slice %99 {offsets = [0, 0], sizes = [2, 32], strides = [1, 1]} : vector<2x128xf32> to vector<2x32xf32>
    %102 = vector.extract_strided_slice %99 {offsets = [0, 32], sizes = [2, 32], strides = [1, 1]} : vector<2x128xf32> to vector<2x32xf32>
    %103 = vector.extract_strided_slice %100 {offsets = [0, 64], sizes = [2, 32], strides = [1, 1]} : vector<2x128xf32> to vector<2x32xf32>
    %104 = vector.extract_strided_slice %99 {offsets = [0, 96], sizes = [2, 32], strides = [1, 1]} : vector<2x128xf32> to vector<2x32xf32>
    %105 = arith.mulf %102, %89 : vector<2x32xf32>
    %106 = arith.mulf %101, %103 : vector<2x32xf32>
    %107 = arith.addf %105, %106 : vector<2x32xf32>
    %108 = math.tanh %107 : vector<2x32xf32>
    %109 = arith.mulf %104, %108 : vector<2x32xf32>
    %110 = vector.extract_strided_slice %53 {offsets = [6, 0], sizes = [2, 128], strides = [1, 1]} : vector<16x128xf32> to vector<2x128xf32>
    %cst_41 = arith.constant dense<0.000000e+00> : vector<2x128xf32>
    %111 = tpu.matmul %109, %48, %cst_41 {dimension_numbers = #tpu.dot_dimension_numbers<[1], [0], [0], [1], [0, 0, 1, 1], [], []>} : vector<2x32xf32>, vector<32x128xf32>, vector<2x128xf32> -> vector<2x128xf32>
    %112 = arith.addf %110, %111 : vector<2x128xf32>
    %113 = arith.negf %112 : vector<2x128xf32>
    %114 = math.exp %113 : vector<2x128xf32>
    %cst_42 = arith.constant 1.000000e+00 : f32
    %115 = vector.broadcast %cst_42 : f32 to vector<2x128xf32>
    %116 = arith.addf %115, %114 : vector<2x128xf32>
    %117 = arith.divf %115, %116 : vector<2x128xf32>
    %118 = math.tanh %112 : vector<2x128xf32>
    %119 = vector.extract_strided_slice %117 {offsets = [0, 0], sizes = [2, 32], strides = [1, 1]} : vector<2x128xf32> to vector<2x32xf32>
    %120 = vector.extract_strided_slice %117 {offsets = [0, 32], sizes = [2, 32], strides = [1, 1]} : vector<2x128xf32> to vector<2x32xf32>
    %121 = vector.extract_strided_slice %118 {offsets = [0, 64], sizes = [2, 32], strides = [1, 1]} : vector<2x128xf32> to vector<2x32xf32>
    %122 = vector.extract_strided_slice %117 {offsets = [0, 96], sizes = [2, 32], strides = [1, 1]} : vector<2x128xf32> to vector<2x32xf32>
    %123 = arith.mulf %120, %107 : vector<2x32xf32>
    %124 = arith.mulf %119, %121 : vector<2x32xf32>
    %125 = arith.addf %123, %124 : vector<2x32xf32>
    %126 = math.tanh %125 : vector<2x32xf32>
    %127 = arith.mulf %122, %126 : vector<2x32xf32>
    %128 = vector.extract_strided_slice %53 {offsets = [8, 0], sizes = [2, 128], strides = [1, 1]} : vector<16x128xf32> to vector<2x128xf32>
    %cst_43 = arith.constant dense<0.000000e+00> : vector<2x128xf32>
    %129 = tpu.matmul %127, %48, %cst_43 {dimension_numbers = #tpu.dot_dimension_numbers<[1], [0], [0], [1], [0, 0, 1, 1], [], []>} : vector<2x32xf32>, vector<32x128xf32>, vector<2x128xf32> -> vector<2x128xf32>
    %130 = arith.addf %128, %129 : vector<2x128xf32>
    %131 = arith.negf %130 : vector<2x128xf32>
    %132 = math.exp %131 : vector<2x128xf32>
    %cst_44 = arith.constant 1.000000e+00 : f32
    %133 = vector.broadcast %cst_44 : f32 to vector<2x128xf32>
    %134 = arith.addf %133, %132 : vector<2x128xf32>
    %135 = arith.divf %133, %134 : vector<2x128xf32>
    %136 = math.tanh %130 : vector<2x128xf32>
    %137 = vector.extract_strided_slice %135 {offsets = [0, 0], sizes = [2, 32], strides = [1, 1]} : vector<2x128xf32> to vector<2x32xf32>
    %138 = vector.extract_strided_slice %135 {offsets = [0, 32], sizes = [2, 32], strides = [1, 1]} : vector<2x128xf32> to vector<2x32xf32>
    %139 = vector.extract_strided_slice %136 {offsets = [0, 64], sizes = [2, 32], strides = [1, 1]} : vector<2x128xf32> to vector<2x32xf32>
    %140 = vector.extract_strided_slice %135 {offsets = [0, 96], sizes = [2, 32], strides = [1, 1]} : vector<2x128xf32> to vector<2x32xf32>
    %141 = arith.mulf %138, %125 : vector<2x32xf32>
    %142 = arith.mulf %137, %139 : vector<2x32xf32>
    %143 = arith.addf %141, %142 : vector<2x32xf32>
    %144 = math.tanh %143 : vector<2x32xf32>
    %145 = arith.mulf %140, %144 : vector<2x32xf32>
    %146 = vector.extract_strided_slice %53 {offsets = [10, 0], sizes = [2, 128], strides = [1, 1]} : vector<16x128xf32> to vector<2x128xf32>
    %cst_45 = arith.constant dense<0.000000e+00> : vector<2x128xf32>
    %147 = tpu.matmul %145, %48, %cst_45 {dimension_numbers = #tpu.dot_dimension_numbers<[1], [0], [0], [1], [0, 0, 1, 1], [], []>} : vector<2x32xf32>, vector<32x128xf32>, vector<2x128xf32> -> vector<2x128xf32>
    %148 = arith.addf %146, %147 : vector<2x128xf32>
    %149 = arith.negf %148 : vector<2x128xf32>
    %150 = math.exp %149 : vector<2x128xf32>
    %cst_46 = arith.constant 1.000000e+00 : f32
    %151 = vector.broadcast %cst_46 : f32 to vector<2x128xf32>
    %152 = arith.addf %151, %150 : vector<2x128xf32>
    %153 = arith.divf %151, %152 : vector<2x128xf32>
    %154 = math.tanh %148 : vector<2x128xf32>
    %155 = vector.extract_strided_slice %153 {offsets = [0, 0], sizes = [2, 32], strides = [1, 1]} : vector<2x128xf32> to vector<2x32xf32>
    %156 = vector.extract_strided_slice %153 {offsets = [0, 32], sizes = [2, 32], strides = [1, 1]} : vector<2x128xf32> to vector<2x32xf32>
    %157 = vector.extract_strided_slice %154 {offsets = [0, 64], sizes = [2, 32], strides = [1, 1]} : vector<2x128xf32> to vector<2x32xf32>
    %158 = vector.extract_strided_slice %153 {offsets = [0, 96], sizes = [2, 32], strides = [1, 1]} : vector<2x128xf32> to vector<2x32xf32>
    %159 = arith.mulf %156, %143 : vector<2x32xf32>
    %160 = arith.mulf %155, %157 : vector<2x32xf32>
    %161 = arith.addf %159, %160 : vector<2x32xf32>
    %162 = math.tanh %161 : vector<2x32xf32>
    %163 = arith.mulf %158, %162 : vector<2x32xf32>
    %164 = vector.extract_strided_slice %53 {offsets = [12, 0], sizes = [2, 128], strides = [1, 1]} : vector<16x128xf32> to vector<2x128xf32>
    %cst_47 = arith.constant dense<0.000000e+00> : vector<2x128xf32>
    %165 = tpu.matmul %163, %48, %cst_47 {dimension_numbers = #tpu.dot_dimension_numbers<[1], [0], [0], [1], [0, 0, 1, 1], [], []>} : vector<2x32xf32>, vector<32x128xf32>, vector<2x128xf32> -> vector<2x128xf32>
    %166 = arith.addf %164, %165 : vector<2x128xf32>
    %167 = arith.negf %166 : vector<2x128xf32>
    %168 = math.exp %167 : vector<2x128xf32>
    %cst_48 = arith.constant 1.000000e+00 : f32
    %169 = vector.broadcast %cst_48 : f32 to vector<2x128xf32>
    %170 = arith.addf %169, %168 : vector<2x128xf32>
    %171 = arith.divf %169, %170 : vector<2x128xf32>
    %172 = math.tanh %166 : vector<2x128xf32>
    %173 = vector.extract_strided_slice %171 {offsets = [0, 0], sizes = [2, 32], strides = [1, 1]} : vector<2x128xf32> to vector<2x32xf32>
    %174 = vector.extract_strided_slice %171 {offsets = [0, 32], sizes = [2, 32], strides = [1, 1]} : vector<2x128xf32> to vector<2x32xf32>
    %175 = vector.extract_strided_slice %172 {offsets = [0, 64], sizes = [2, 32], strides = [1, 1]} : vector<2x128xf32> to vector<2x32xf32>
    %176 = vector.extract_strided_slice %171 {offsets = [0, 96], sizes = [2, 32], strides = [1, 1]} : vector<2x128xf32> to vector<2x32xf32>
    %177 = arith.mulf %174, %161 : vector<2x32xf32>
    %178 = arith.mulf %173, %175 : vector<2x32xf32>
    %179 = arith.addf %177, %178 : vector<2x32xf32>
    %180 = math.tanh %179 : vector<2x32xf32>
    %181 = arith.mulf %176, %180 : vector<2x32xf32>
    %182 = vector.extract_strided_slice %53 {offsets = [14, 0], sizes = [2, 128], strides = [1, 1]} : vector<16x128xf32> to vector<2x128xf32>
    %cst_49 = arith.constant dense<0.000000e+00> : vector<2x128xf32>
    %183 = tpu.matmul %181, %48, %cst_49 {dimension_numbers = #tpu.dot_dimension_numbers<[1], [0], [0], [1], [0, 0, 1, 1], [], []>} : vector<2x32xf32>, vector<32x128xf32>, vector<2x128xf32> -> vector<2x128xf32>
    %184 = arith.addf %182, %183 : vector<2x128xf32>
    %185 = arith.negf %184 : vector<2x128xf32>
    %186 = math.exp %185 : vector<2x128xf32>
    %cst_50 = arith.constant 1.000000e+00 : f32
    %187 = vector.broadcast %cst_50 : f32 to vector<2x128xf32>
    %188 = arith.addf %187, %186 : vector<2x128xf32>
    %189 = arith.divf %187, %188 : vector<2x128xf32>
    %190 = math.tanh %184 : vector<2x128xf32>
    %191 = vector.extract_strided_slice %189 {offsets = [0, 0], sizes = [2, 32], strides = [1, 1]} : vector<2x128xf32> to vector<2x32xf32>
    %192 = vector.extract_strided_slice %189 {offsets = [0, 32], sizes = [2, 32], strides = [1, 1]} : vector<2x128xf32> to vector<2x32xf32>
    %193 = vector.extract_strided_slice %190 {offsets = [0, 64], sizes = [2, 32], strides = [1, 1]} : vector<2x128xf32> to vector<2x32xf32>
    %194 = vector.extract_strided_slice %189 {offsets = [0, 96], sizes = [2, 32], strides = [1, 1]} : vector<2x128xf32> to vector<2x32xf32>
    %195 = arith.mulf %192, %179 : vector<2x32xf32>
    %196 = arith.mulf %191, %193 : vector<2x32xf32>
    %197 = arith.addf %195, %196 : vector<2x32xf32>
    %198 = math.tanh %197 : vector<2x32xf32>
    %199 = arith.mulf %194, %198 : vector<2x32xf32>
    %c0_51 = arith.constant 0 : index
    %c0_52 = arith.constant 0 : index
    %c0_53 = arith.constant 0 : index
    %200 = vector.load %arg7[%c0_51, %c0_52, %c0_53] : memref<2x2x32xf32, #tpu.memory_space<vmem>>, vector<1x2x32xf32>
    %201 = vector.shape_cast %200 : vector<1x2x32xf32> to vector<2x32xf32>
    %202 = vector.shape_cast %199 : vector<2x32xf32> to vector<1x2x32xf32>
    tpu.vector_store %arg7[%c0_51, %c0_52, %c0_53], %202 {strides = array<i32>} : memref<2x2x32xf32, #tpu.memory_space<vmem>>, vector<1x2x32xf32>,
    %c0_54 = arith.constant 0 : index
    %c0_55 = arith.constant 0 : index
    %c0_56 = arith.constant 0 : index
    %203 = vector.load %arg8[%c0_54, %c0_55, %c0_56] : memref<2x2x32xf32, #tpu.memory_space<vmem>>, vector<1x2x32xf32>
    %204 = vector.shape_cast %203 : vector<1x2x32xf32> to vector<2x32xf32>
    %205 = vector.shape_cast %197 : vector<2x32xf32> to vector<1x2x32xf32>
    tpu.vector_store %arg8[%c0_54, %c0_55, %c0_56], %205 {strides = array<i32>} : memref<2x2x32xf32, #tpu.memory_space<vmem>>, vector<1x2x32xf32>,
    %206 = tpu.concatenate %73, %91, %109, %127, %145, %163, %181, %199 in 0 : vector<2x32xf32>, vector<2x32xf32>, vector<2x32xf32>, vector<2x32xf32>, vector<2x32xf32>, vector<2x32xf32>, vector<2x32xf32>, vector<2x32xf32> -> vector<16x32xf32>
    %c1_57 = arith.constant 1 : index
    %c0_58 = arith.constant 0 : index
    %c0_59 = arith.constant 0 : index
    %207 = vector.load %arg3[%c1_57, %c0_58, %c0_59] : memref<2x32x128xf32, #tpu.memory_space<vmem>>, vector<1x32x128xf32>
    %208 = vector.shape_cast %207 : vector<1x32x128xf32> to vector<32x128xf32>
    %c1_60 = arith.constant 1 : index
    %c0_61 = arith.constant 0 : index
    %c0_62 = arith.constant 0 : index
    %209 = vector.load %arg4[%c1_60, %c0_61, %c0_62] : memref<2x32x128xf32, #tpu.memory_space<vmem>>, vector<1x32x128xf32>
    %210 = vector.shape_cast %209 : vector<1x32x128xf32> to vector<32x128xf32>
    %c1_63 = arith.constant 1 : index
    %c0_64 = arith.constant 0 : index
    %c0_65 = arith.constant 0 : index
    %211 = vector.load %arg5[%c1_63, %c0_64, %c0_65] : memref<2x1x128xf32, #tpu.memory_space<vmem>>, vector<1x1x128xf32>
    %212 = vector.shape_cast %211 : vector<1x1x128xf32> to vector<1x128xf32>
    %cst_66 = arith.constant dense<0.000000e+00> : vector<16x128xf32>
    %213 = tpu.matmul %206, %208, %cst_66 {dimension_numbers = #tpu.dot_dimension_numbers<[1], [0], [0], [1], [0, 0, 1, 1], [], []>} : vector<16x32xf32>, vector<32x128xf32>, vector<16x128xf32> -> vector<16x128xf32>
    %214 = vector.broadcast %212 : vector<1x128xf32> to vector<16x128xf32>
    %215 = arith.addf %213, %214 : vector<16x128xf32>
    %cst_67 = arith.constant 0.000000e+00 : f32
    %216 = vector.broadcast %cst_67 : f32 to vector<2x32xf32>
    %cst_68 = arith.constant 0.000000e+00 : f32
    %217 = vector.broadcast %cst_68 : f32 to vector<2x32xf32>
    %218 = vector.extract_strided_slice %215 {offsets = [0, 0], sizes = [2, 128], strides = [1, 1]} : vector<16x128xf32> to vector<2x128xf32>
    %cst_69 = arith.constant dense<0.000000e+00> : vector<2x128xf32>
    %219 = tpu.matmul %216, %210, %cst_69 {dimension_numbers = #tpu.dot_dimension_numbers<[1], [0], [0], [1], [0, 0, 1, 1], [], []>} : vector<2x32xf32>, vector<32x128xf32>, vector<2x128xf32> -> vector<2x128xf32>
    %220 = arith.addf %218, %219 : vector<2x128xf32>
    %221 = arith.negf %220 : vector<2x128xf32>
    %222 = math.exp %221 : vector<2x128xf32>
    %cst_70 = arith.constant 1.000000e+00 : f32
    %223 = vector.broadcast %cst_70 : f32 to vector<2x128xf32>
    %224 = arith.addf %223, %222 : vector<2x128xf32>
    %225 = arith.divf %223, %224 : vector<2x128xf32>
    %226 = math.tanh %220 : vector<2x128xf32>
    %227 = vector.extract_strided_slice %225 {offsets = [0, 0], sizes = [2, 32], strides = [1, 1]} : vector<2x128xf32> to vector<2x32xf32>
    %228 = vector.extract_strided_slice %225 {offsets = [0, 32], sizes = [2, 32], strides = [1, 1]} : vector<2x128xf32> to vector<2x32xf32>
    %229 = vector.extract_strided_slice %226 {offsets = [0, 64], sizes = [2, 32], strides = [1, 1]} : vector<2x128xf32> to vector<2x32xf32>
    %230 = vector.extract_strided_slice %225 {offsets = [0, 96], sizes = [2, 32], strides = [1, 1]} : vector<2x128xf32> to vector<2x32xf32>
    %231 = arith.mulf %228, %217 : vector<2x32xf32>
    %232 = arith.mulf %227, %229 : vector<2x32xf32>
    %233 = arith.addf %231, %232 : vector<2x32xf32>
    %234 = math.tanh %233 : vector<2x32xf32>
    %235 = arith.mulf %230, %234 : vector<2x32xf32>
    %236 = vector.extract_strided_slice %215 {offsets = [2, 0], sizes = [2, 128], strides = [1, 1]} : vector<16x128xf32> to vector<2x128xf32>
    %cst_71 = arith.constant dense<0.000000e+00> : vector<2x128xf32>
    %237 = tpu.matmul %235, %210, %cst_71 {dimension_numbers = #tpu.dot_dimension_numbers<[1], [0], [0], [1], [0, 0, 1, 1], [], []>} : vector<2x32xf32>, vector<32x128xf32>, vector<2x128xf32> -> vector<2x128xf32>
    %238 = arith.addf %236, %237 : vector<2x128xf32>
    %239 = arith.negf %238 : vector<2x128xf32>
    %240 = math.exp %239 : vector<2x128xf32>
    %cst_72 = arith.constant 1.000000e+00 : f32
    %241 = vector.broadcast %cst_72 : f32 to vector<2x128xf32>
    %242 = arith.addf %241, %240 : vector<2x128xf32>
    %243 = arith.divf %241, %242 : vector<2x128xf32>
    %244 = math.tanh %238 : vector<2x128xf32>
    %245 = vector.extract_strided_slice %243 {offsets = [0, 0], sizes = [2, 32], strides = [1, 1]} : vector<2x128xf32> to vector<2x32xf32>
    %246 = vector.extract_strided_slice %243 {offsets = [0, 32], sizes = [2, 32], strides = [1, 1]} : vector<2x128xf32> to vector<2x32xf32>
    %247 = vector.extract_strided_slice %244 {offsets = [0, 64], sizes = [2, 32], strides = [1, 1]} : vector<2x128xf32> to vector<2x32xf32>
    %248 = vector.extract_strided_slice %243 {offsets = [0, 96], sizes = [2, 32], strides = [1, 1]} : vector<2x128xf32> to vector<2x32xf32>
    %249 = arith.mulf %246, %233 : vector<2x32xf32>
    %250 = arith.mulf %245, %247 : vector<2x32xf32>
    %251 = arith.addf %249, %250 : vector<2x32xf32>
    %252 = math.tanh %251 : vector<2x32xf32>
    %253 = arith.mulf %248, %252 : vector<2x32xf32>
    %254 = vector.extract_strided_slice %215 {offsets = [4, 0], sizes = [2, 128], strides = [1, 1]} : vector<16x128xf32> to vector<2x128xf32>
    %cst_73 = arith.constant dense<0.000000e+00> : vector<2x128xf32>
    %255 = tpu.matmul %253, %210, %cst_73 {dimension_numbers = #tpu.dot_dimension_numbers<[1], [0], [0], [1], [0, 0, 1, 1], [], []>} : vector<2x32xf32>, vector<32x128xf32>, vector<2x128xf32> -> vector<2x128xf32>
    %256 = arith.addf %254, %255 : vector<2x128xf32>
    %257 = arith.negf %256 : vector<2x128xf32>
    %258 = math.exp %257 : vector<2x128xf32>
    %cst_74 = arith.constant 1.000000e+00 : f32
    %259 = vector.broadcast %cst_74 : f32 to vector<2x128xf32>
    %260 = arith.addf %259, %258 : vector<2x128xf32>
    %261 = arith.divf %259, %260 : vector<2x128xf32>
    %262 = math.tanh %256 : vector<2x128xf32>
    %263 = vector.extract_strided_slice %261 {offsets = [0, 0], sizes = [2, 32], strides = [1, 1]} : vector<2x128xf32> to vector<2x32xf32>
    %264 = vector.extract_strided_slice %261 {offsets = [0, 32], sizes = [2, 32], strides = [1, 1]} : vector<2x128xf32> to vector<2x32xf32>
    %265 = vector.extract_strided_slice %262 {offsets = [0, 64], sizes = [2, 32], strides = [1, 1]} : vector<2x128xf32> to vector<2x32xf32>
    %266 = vector.extract_strided_slice %261 {offsets = [0, 96], sizes = [2, 32], strides = [1, 1]} : vector<2x128xf32> to vector<2x32xf32>
    %267 = arith.mulf %264, %251 : vector<2x32xf32>
    %268 = arith.mulf %263, %265 : vector<2x32xf32>
    %269 = arith.addf %267, %268 : vector<2x32xf32>
    %270 = math.tanh %269 : vector<2x32xf32>
    %271 = arith.mulf %266, %270 : vector<2x32xf32>
    %272 = vector.extract_strided_slice %215 {offsets = [6, 0], sizes = [2, 128], strides = [1, 1]} : vector<16x128xf32> to vector<2x128xf32>
    %cst_75 = arith.constant dense<0.000000e+00> : vector<2x128xf32>
    %273 = tpu.matmul %271, %210, %cst_75 {dimension_numbers = #tpu.dot_dimension_numbers<[1], [0], [0], [1], [0, 0, 1, 1], [], []>} : vector<2x32xf32>, vector<32x128xf32>, vector<2x128xf32> -> vector<2x128xf32>
    %274 = arith.addf %272, %273 : vector<2x128xf32>
    %275 = arith.negf %274 : vector<2x128xf32>
    %276 = math.exp %275 : vector<2x128xf32>
    %cst_76 = arith.constant 1.000000e+00 : f32
    %277 = vector.broadcast %cst_76 : f32 to vector<2x128xf32>
    %278 = arith.addf %277, %276 : vector<2x128xf32>
    %279 = arith.divf %277, %278 : vector<2x128xf32>
    %280 = math.tanh %274 : vector<2x128xf32>
    %281 = vector.extract_strided_slice %279 {offsets = [0, 0], sizes = [2, 32], strides = [1, 1]} : vector<2x128xf32> to vector<2x32xf32>
    %282 = vector.extract_strided_slice %279 {offsets = [0, 32], sizes = [2, 32], strides = [1, 1]} : vector<2x128xf32> to vector<2x32xf32>
    %283 = vector.extract_strided_slice %280 {offsets = [0, 64], sizes = [2, 32], strides = [1, 1]} : vector<2x128xf32> to vector<2x32xf32>
    %284 = vector.extract_strided_slice %279 {offsets = [0, 96], sizes = [2, 32], strides = [1, 1]} : vector<2x128xf32> to vector<2x32xf32>
    %285 = arith.mulf %282, %269 : vector<2x32xf32>
    %286 = arith.mulf %281, %283 : vector<2x32xf32>
    %287 = arith.addf %285, %286 : vector<2x32xf32>
    %288 = math.tanh %287 : vector<2x32xf32>
    %289 = arith.mulf %284, %288 : vector<2x32xf32>
    %290 = vector.extract_strided_slice %215 {offsets = [8, 0], sizes = [2, 128], strides = [1, 1]} : vector<16x128xf32> to vector<2x128xf32>
    %cst_77 = arith.constant dense<0.000000e+00> : vector<2x128xf32>
    %291 = tpu.matmul %289, %210, %cst_77 {dimension_numbers = #tpu.dot_dimension_numbers<[1], [0], [0], [1], [0, 0, 1, 1], [], []>} : vector<2x32xf32>, vector<32x128xf32>, vector<2x128xf32> -> vector<2x128xf32>
    %292 = arith.addf %290, %291 : vector<2x128xf32>
    %293 = arith.negf %292 : vector<2x128xf32>
    %294 = math.exp %293 : vector<2x128xf32>
    %cst_78 = arith.constant 1.000000e+00 : f32
    %295 = vector.broadcast %cst_78 : f32 to vector<2x128xf32>
    %296 = arith.addf %295, %294 : vector<2x128xf32>
    %297 = arith.divf %295, %296 : vector<2x128xf32>
    %298 = math.tanh %292 : vector<2x128xf32>
    %299 = vector.extract_strided_slice %297 {offsets = [0, 0], sizes = [2, 32], strides = [1, 1]} : vector<2x128xf32> to vector<2x32xf32>
    %300 = vector.extract_strided_slice %297 {offsets = [0, 32], sizes = [2, 32], strides = [1, 1]} : vector<2x128xf32> to vector<2x32xf32>
    %301 = vector.extract_strided_slice %298 {offsets = [0, 64], sizes = [2, 32], strides = [1, 1]} : vector<2x128xf32> to vector<2x32xf32>
    %302 = vector.extract_strided_slice %297 {offsets = [0, 96], sizes = [2, 32], strides = [1, 1]} : vector<2x128xf32> to vector<2x32xf32>
    %303 = arith.mulf %300, %287 : vector<2x32xf32>
    %304 = arith.mulf %299, %301 : vector<2x32xf32>
    %305 = arith.addf %303, %304 : vector<2x32xf32>
    %306 = math.tanh %305 : vector<2x32xf32>
    %307 = arith.mulf %302, %306 : vector<2x32xf32>
    %308 = vector.extract_strided_slice %215 {offsets = [10, 0], sizes = [2, 128], strides = [1, 1]} : vector<16x128xf32> to vector<2x128xf32>
    %cst_79 = arith.constant dense<0.000000e+00> : vector<2x128xf32>
    %309 = tpu.matmul %307, %210, %cst_79 {dimension_numbers = #tpu.dot_dimension_numbers<[1], [0], [0], [1], [0, 0, 1, 1], [], []>} : vector<2x32xf32>, vector<32x128xf32>, vector<2x128xf32> -> vector<2x128xf32>
    %310 = arith.addf %308, %309 : vector<2x128xf32>
    %311 = arith.negf %310 : vector<2x128xf32>
    %312 = math.exp %311 : vector<2x128xf32>
    %cst_80 = arith.constant 1.000000e+00 : f32
    %313 = vector.broadcast %cst_80 : f32 to vector<2x128xf32>
    %314 = arith.addf %313, %312 : vector<2x128xf32>
    %315 = arith.divf %313, %314 : vector<2x128xf32>
    %316 = math.tanh %310 : vector<2x128xf32>
    %317 = vector.extract_strided_slice %315 {offsets = [0, 0], sizes = [2, 32], strides = [1, 1]} : vector<2x128xf32> to vector<2x32xf32>
    %318 = vector.extract_strided_slice %315 {offsets = [0, 32], sizes = [2, 32], strides = [1, 1]} : vector<2x128xf32> to vector<2x32xf32>
    %319 = vector.extract_strided_slice %316 {offsets = [0, 64], sizes = [2, 32], strides = [1, 1]} : vector<2x128xf32> to vector<2x32xf32>
    %320 = vector.extract_strided_slice %315 {offsets = [0, 96], sizes = [2, 32], strides = [1, 1]} : vector<2x128xf32> to vector<2x32xf32>
    %321 = arith.mulf %318, %305 : vector<2x32xf32>
    %322 = arith.mulf %317, %319 : vector<2x32xf32>
    %323 = arith.addf %321, %322 : vector<2x32xf32>
    %324 = math.tanh %323 : vector<2x32xf32>
    %325 = arith.mulf %320, %324 : vector<2x32xf32>
    %326 = vector.extract_strided_slice %215 {offsets = [12, 0], sizes = [2, 128], strides = [1, 1]} : vector<16x128xf32> to vector<2x128xf32>
    %cst_81 = arith.constant dense<0.000000e+00> : vector<2x128xf32>
    %327 = tpu.matmul %325, %210, %cst_81 {dimension_numbers = #tpu.dot_dimension_numbers<[1], [0], [0], [1], [0, 0, 1, 1], [], []>} : vector<2x32xf32>, vector<32x128xf32>, vector<2x128xf32> -> vector<2x128xf32>
    %328 = arith.addf %326, %327 : vector<2x128xf32>
    %329 = arith.negf %328 : vector<2x128xf32>
    %330 = math.exp %329 : vector<2x128xf32>
    %cst_82 = arith.constant 1.000000e+00 : f32
    %331 = vector.broadcast %cst_82 : f32 to vector<2x128xf32>
    %332 = arith.addf %331, %330 : vector<2x128xf32>
    %333 = arith.divf %331, %332 : vector<2x128xf32>
    %334 = math.tanh %328 : vector<2x128xf32>
    %335 = vector.extract_strided_slice %333 {offsets = [0, 0], sizes = [2, 32], strides = [1, 1]} : vector<2x128xf32> to vector<2x32xf32>
    %336 = vector.extract_strided_slice %333 {offsets = [0, 32], sizes = [2, 32], strides = [1, 1]} : vector<2x128xf32> to vector<2x32xf32>
    %337 = vector.extract_strided_slice %334 {offsets = [0, 64], sizes = [2, 32], strides = [1, 1]} : vector<2x128xf32> to vector<2x32xf32>
    %338 = vector.extract_strided_slice %333 {offsets = [0, 96], sizes = [2, 32], strides = [1, 1]} : vector<2x128xf32> to vector<2x32xf32>
    %339 = arith.mulf %336, %323 : vector<2x32xf32>
    %340 = arith.mulf %335, %337 : vector<2x32xf32>
    %341 = arith.addf %339, %340 : vector<2x32xf32>
    %342 = math.tanh %341 : vector<2x32xf32>
    %343 = arith.mulf %338, %342 : vector<2x32xf32>
    %344 = vector.extract_strided_slice %215 {offsets = [14, 0], sizes = [2, 128], strides = [1, 1]} : vector<16x128xf32> to vector<2x128xf32>
    %cst_83 = arith.constant dense<0.000000e+00> : vector<2x128xf32>
    %345 = tpu.matmul %343, %210, %cst_83 {dimension_numbers = #tpu.dot_dimension_numbers<[1], [0], [0], [1], [0, 0, 1, 1], [], []>} : vector<2x32xf32>, vector<32x128xf32>, vector<2x128xf32> -> vector<2x128xf32>
    %346 = arith.addf %344, %345 : vector<2x128xf32>
    %347 = arith.negf %346 : vector<2x128xf32>
    %348 = math.exp %347 : vector<2x128xf32>
    %cst_84 = arith.constant 1.000000e+00 : f32
    %349 = vector.broadcast %cst_84 : f32 to vector<2x128xf32>
    %350 = arith.addf %349, %348 : vector<2x128xf32>
    %351 = arith.divf %349, %350 : vector<2x128xf32>
    %352 = math.tanh %346 : vector<2x128xf32>
    %353 = vector.extract_strided_slice %351 {offsets = [0, 0], sizes = [2, 32], strides = [1, 1]} : vector<2x128xf32> to vector<2x32xf32>
    %354 = vector.extract_strided_slice %351 {offsets = [0, 32], sizes = [2, 32], strides = [1, 1]} : vector<2x128xf32> to vector<2x32xf32>
    %355 = vector.extract_strided_slice %352 {offsets = [0, 64], sizes = [2, 32], strides = [1, 1]} : vector<2x128xf32> to vector<2x32xf32>
    %356 = vector.extract_strided_slice %351 {offsets = [0, 96], sizes = [2, 32], strides = [1, 1]} : vector<2x128xf32> to vector<2x32xf32>
    %357 = arith.mulf %354, %341 : vector<2x32xf32>
    %358 = arith.mulf %353, %355 : vector<2x32xf32>
    %359 = arith.addf %357, %358 : vector<2x32xf32>
    %360 = math.tanh %359 : vector<2x32xf32>
    %361 = arith.mulf %356, %360 : vector<2x32xf32>
    %c1_85 = arith.constant 1 : index
    %c0_86 = arith.constant 0 : index
    %c0_87 = arith.constant 0 : index
    %362 = vector.load %arg7[%c1_85, %c0_86, %c0_87] : memref<2x2x32xf32, #tpu.memory_space<vmem>>, vector<1x2x32xf32>
    %363 = vector.shape_cast %362 : vector<1x2x32xf32> to vector<2x32xf32>
    %364 = vector.shape_cast %361 : vector<2x32xf32> to vector<1x2x32xf32>
    tpu.vector_store %arg7[%c1_85, %c0_86, %c0_87], %364 {strides = array<i32>} : memref<2x2x32xf32, #tpu.memory_space<vmem>>, vector<1x2x32xf32>,
    %c1_88 = arith.constant 1 : index
    %c0_89 = arith.constant 0 : index
    %c0_90 = arith.constant 0 : index
    %365 = vector.load %arg8[%c1_88, %c0_89, %c0_90] : memref<2x2x32xf32, #tpu.memory_space<vmem>>, vector<1x2x32xf32>
    %366 = vector.shape_cast %365 : vector<1x2x32xf32> to vector<2x32xf32>
    %367 = vector.shape_cast %359 : vector<2x32xf32> to vector<1x2x32xf32>
    tpu.vector_store %arg8[%c1_88, %c0_89, %c0_90], %367 {strides = array<i32>} : memref<2x2x32xf32, #tpu.memory_space<vmem>>, vector<1x2x32xf32>,
    %368 = tpu.concatenate %235, %253, %271, %289, %307, %325, %343, %361 in 1 : vector<2x32xf32>, vector<2x32xf32>, vector<2x32xf32>, vector<2x32xf32>, vector<2x32xf32>, vector<2x32xf32>, vector<2x32xf32>, vector<2x32xf32> -> vector<2x256xf32>
    %c0_91 = arith.constant 0 : index
    %c0_92 = arith.constant 0 : index
    %369 = vector.load %arg6[%c0_91, %c0_92] : memref<2x256xf32, #tpu.memory_space<vmem>>, vector<2x256xf32>
    tpu.vector_store %arg6[%c0_91, %c0_92], %368 {strides = array<i32>} : memref<2x256xf32, #tpu.memory_space<vmem>>, vector<2x256xf32>,
    return
  }
}

</mosaic_0001>

<bundles_post_ra>
// kernel: _forward.1
= control target key start
LH: loop header
LB: loop body
LE: loop exit
PB: predicated region body
PF: predicated region fallthrough
CT: control target
= control target key end

     0   :  { %14 = vsyncpa [#allocation3], 0  ;;  %s3698_s0 = inlined_call_operand.hbm [shape: f32[2,8,32], index: 0, kind: input, shape index: {}]   ;;  %s3699_s1 = inlined_call_operand.hbm [shape: f32[3,32,32], index: 1, kind: input, shape index: {}]   ;;  %s3700_s2 = inlined_call_operand.vmem [shape: f32[3,1,32], index: 2, kind: input, shape index: {}]   ;;  %s3701_s3 = inlined_call_operand.hbm [shape: f32[2,32,128], index: 3, kind: input, shape index: {}]   ;;  %s3702_s4 = inlined_call_operand.hbm [shape: f32[2,32,128], index: 4, kind: input, shape index: {}]   ;;  %s3703_s5 = inlined_call_operand.vmem [shape: f32[2,1,128], index: 5, kind: input, shape index: {}]   ;;  %s3704_s6 = inlined_call_operand.vmem [shape: f32[2,256], index: 6, kind: output, shape index: {0}]   ;;  %s3705_s7 = inlined_call_operand.hbm [shape: f32[2,2,32], index: 7, kind: output, shape index: {1}]   ;;  %s3706_s8 = inlined_call_operand.hbm [shape: f32[2,2,32], index: 8, kind: output, shape index: {2}]  }
   0x1   :  { %15 = vsyncpa [#allocation6], 0 }
   0x2   :  { %16 = vsyncpa [#allocation9], 0 }
   0x3   :  { %17 = vsyncpa [#allocation4], 0 }
   0x4   :  { %18 = vsyncpa [#allocation12], 0  ;;  %s3213_s27 = smov [#allocation5]   ;;  %s3214_s29 = smov [#allocation2]  }
   0x5   :  { %s36_s28 = sshll.u32 %s3213_s27, 4  ;;  %s24_s30 = sshll.u32 %s3214_s29, 4  ;;  %s37_s28 = int_to_ptr.vmem [resolvable:$true] %s36_s28  ;;  %s3273_s30 = int_to_ptr.vmem [resolvable:$true] %s24_s30 }
   0x6   :  { %s3071_s11 = scalar_lea.hbm %s3699_s1, 1536 }
   0x7   :  { %p3072_p0 = scmp.ne.s32.totalorder %s3699_s1, %s3071_s11  ;;  %p3075_p1 = scmp.lt.u32.totalorder %s3071_s11, %s3699_s1 }
   0x9   :  { %p3077_p2 = pnand %p3075_p1, %p3072_p0 }
   0xb   :  { %3080 = shalt.err (!%p3077_p2)
}
   0xc   :  { %s3081_s16 = scalar_lea.vmem %s37_s28, 1536  ;;  %p3086_p4 = scmp.lt.s32.totalorder %s37_s28, %s37_s28 }
   0xd   :  { %p3082_p3 = scmp.ne.s32.totalorder %s37_s28, %s3081_s16  ;;  %p3087_p5 = scmp.lt.s32.totalorder %s3081_s16, %s3081_s16 }
   0xf   :  { %p3088_p6 = por %p3087_p5, %p3086_p4 }
  0x11   :  { %p3089_p7 = pnand %p3088_p6, %p3082_p3 }
  0x13   :  { %3092 = shalt.err (!%p3089_p7)
}
  0x14   :  { %s3215_s17 = smov 128   ;;  %s3216_s18 = smov 8  }
  0x15   :  { %42 = dma.hbm_to_vmem [thread:$0]  %s3699_s1, 1536, %s37_s28, [#allocation6], %s3215_s17, %s3215_s17, %s3216_s18  }
  0x16   :  { %s3093_s23 = scalar_lea.hbm %s3698_s0, 256 }
  0x17   :  { %p3094_p8 = scmp.ne.s32.totalorder %s3698_s0, %s3093_s23  ;;  %p3097_p9 = scmp.lt.u32.totalorder %s3093_s23, %s3698_s0 }
  0x19   :  { %p3099_p10 = pnand %p3097_p9, %p3094_p8 }
  0x1b   :  { %3102 = shalt.err (!%p3099_p10)
}
  0x1c   :  { %s3103_s29 = scalar_lea.vmem %s3273_s30, 256  ;;  %p3108_p12 = scmp.lt.s32.totalorder %s3273_s30, %s3273_s30 }
  0x1d   :  { %p3104_p11 = scmp.ne.s32.totalorder %s3273_s30, %s3103_s29  ;;  %p3109_p13 = scmp.lt.s32.totalorder %s3103_s29, %s3103_s29 }
  0x1f   :  { %p3110_p0 = por %p3109_p13, %p3108_p12 }
  0x21   :  { %p3111_p1 = pnand %p3110_p0, %p3104_p11 }
  0x23   :  { %3114 = shalt.err (!%p3111_p1)
}
  0x24   :  { %30 = dma.hbm_to_vmem [thread:$0]  %s3698_s0, 256, %s3273_s30, [#allocation3], %s3215_s17, %s3215_s17, %s3216_s18  }
  0x25   :  { %s3217_s9 = smov [#allocation7]   ;;  %s3218_s11 = smov [#allocation8]  }
  0x26   :  { %s50_s10 = sshll.u32 %s3217_s9, 4  ;;  %s62_s12 = sshll.u32 %s3218_s11, 4  ;;  %s51_s10 = int_to_ptr.vmem [resolvable:$true] %s50_s10  ;;  %s3310_s12 = int_to_ptr.vmem [resolvable:$true] %s62_s12 }
  0x27   :  { %s3115_s15 = scalar_lea.hbm %s3701_s3, 1024 }
  0x28   :  { %p3116_p2 = scmp.ne.s32.totalorder %s3701_s3, %s3115_s15  ;;  %p3119_p3 = scmp.lt.u32.totalorder %s3115_s15, %s3701_s3 }
  0x2a   :  { %p3121_p4 = pnand %p3119_p3, %p3116_p2 }
  0x2c   :  { %3124 = shalt.err (!%p3121_p4)
}
  0x2d   :  { %s3125_s0 = scalar_lea.vmem %s51_s10, 1024  ;;  %p3130_p6 = scmp.lt.s32.totalorder %s51_s10, %s51_s10 }
  0x2e   :  { %p3126_p5 = scmp.ne.s32.totalorder %s51_s10, %s3125_s0  ;;  %p3131_p7 = scmp.lt.s32.totalorder %s3125_s0, %s3125_s0 }
  0x30   :  { %p3132_p8 = por %p3131_p7, %p3130_p6 }
  0x32   :  { %p3133_p9 = pnand %p3132_p8, %p3126_p5 }
  0x34   :  { %3136 = shalt.err (!%p3133_p9)
}
  0x35   :  { %56 = dma.hbm_to_vmem [thread:$0]  %s3701_s3, 1024, %s51_s10, [#allocation6], %s3215_s17, %s3215_s17, %s3216_s18  }
  0x36   :  { %s3137_s25 = scalar_lea.hbm %s3702_s4, 1024 }
  0x37   :  { %p3138_p10 = scmp.ne.s32.totalorder %s3702_s4, %s3137_s25  ;;  %p3141_p11 = scmp.lt.u32.totalorder %s3137_s25, %s3702_s4 }
  0x39   :  { %p3143_p12 = pnand %p3141_p11, %p3138_p10 }
  0x3b   :  { %3146 = shalt.err (!%p3143_p12)
}
  0x3c   :  { %s3147_s28 = scalar_lea.vmem %s3310_s12, 1024  ;;  %p3152_p0 = scmp.lt.s32.totalorder %s3310_s12, %s3310_s12 }
  0x3d   :  { %p3148_p13 = scmp.ne.s32.totalorder %s3310_s12, %s3147_s28  ;;  %p3153_p1 = scmp.lt.s32.totalorder %s3147_s28, %s3147_s28 }
  0x3f   :  { %p3154_p2 = por %p3153_p1, %p3152_p0 }
  0x41   :  { %p3155_p3 = pnand %p3154_p2, %p3148_p13 }
  0x43   :  { %3158 = shalt.err (!%p3155_p3)
}
  0x44   :  { %68 = dma.hbm_to_vmem [thread:$0]  %s3702_s4, 1024, %s3310_s12, [#allocation9], %s3215_s17, %s3215_s17, %s3216_s18  }
  0x45   :  { %3203 = dma.done.wait [#allocation3], 256  }
  0x46   :  { %3204 = vsyncadd [#allocation3], 4294967040 }
  0x47   :  { %3205 = dma.done.wait [#allocation6], 2560  }
  0x48   :  { %3206 = vsyncadd [#allocation6], 4294964736 }
  0x49   :  { %3207 = dma.done.wait [#allocation9], 1024  }
  0x4a   :  { %3208 = vsyncadd [#allocation9], 4294966272  ;;  %vm88_vm0 = vcmask 1041409   ;;  %vm93_vm1 = vcmask 1043459   ;;  %v130_v0 = vld [vmem:[#allocation5] sm:$0xff]  ;;  %v131_v1 = vld [vmem:[#allocation5 + $0x8] sm:$0xff] }
  0x4b   :  { %v132_v2 = vld [vmem:[#allocation5 + $0x10] sm:$0xff]  ;;  %vm98_vm2 = vcmask 1045509   ;;  %vm103_vm3 = vcmask 1047559   ;;  %vm121_vm4 = vcmask 1041408   ;;  %v2792_v3 = vpack.c.bf16 %v131_v1, %v130_v0  ;;  %v133_v4 = vld [vmem:[#allocation5 + $0x18] sm:$0xff]  ;;  %v226_v19 = vld [vmem:[#allocation5 + $0x20] sm:$0xff] }
  0x4c   :  { %v83_v5 = vld [vmem:[#allocation2] sm:$0xff]  ;;  %v84_v6 = vld [vmem:[#allocation2 + $0x8] sm:$0xff]  ;;  %vm123_vm5 = vcmask 1043456   ;;  %vm125_vm6 = vcmask 1045504   ;;  %vm141_vm7 = vcmask 261120   ;;  %v2796_v7 = vpack.c.bf16 %v133_v4, %v132_v2  ;;  %v227_v20 = vld [vmem:[#allocation5 + $0x28] sm:$0xff] }
  0x4d   :  { %v87_v8 = vrot.slane %v84_v6, 7  ;;  %v91_v9 = vrot.slane %v83_v5, 7  ;;  %v92_v10 = vrot.slane %v84_v6, 6  ;;  %2793 = vmatprep.subr.bf16.mxu0 %v2792_v3  ;;  %v96_v11 = vrot.slane %v83_v5, 6  ;;  %v228_v39 = vld [vmem:[#allocation5 + $0x30] sm:$0xff]  ;;  %v229_v40 = vld [vmem:[#allocation5 + $0x38] sm:$0xff] }
  0x4e   :  { %v97_v12 = vrot.slane %v84_v6, 5  ;;  %v101_v13 = vrot.slane %v83_v5, 5  ;;  %v102_v14 = vrot.slane %v84_v6, 4  ;;  %2795 = vmatpush3.bf16.msra.mxu0 %v2792_v3  ;;  %v106_v17 = vrot.slane %v83_v5, 4  ;;  %v322_v42 = vld [vmem:[#allocation5 + $0x40] sm:$0xff]  ;;  %v323_v43 = vld [vmem:[#allocation5 + $0x48] sm:$0xff] }
  0x4f   :  { %v89_v15 = vsel %vm88_vm0, %v87_v8, %v83_v5  ;;  %v94_v16 = vsel %vm93_vm1, %v92_v10, %v91_v9  ;;  %v107_v18 = vrot.slane %v84_v6, 3  ;;  %2797 = vmatprep.subr.bf16.mxu0 %v2796_v7  ;;  %v110_v24 = vrot.slane %v83_v5, 3  ;;  %v2402_v45 = vld [vmem:[%s3700_s2] ss:$0 sm:$0xff]  ;;  %v325_v53 = vld [vmem:[#allocation5 + $0x58] sm:$0xff]  ;;  %v417_v55 = vld [vmem:[#allocation7] sm:$0xff] }
  0x50   :  { %v99_v21 = vsel %vm98_vm2, %v97_v12, %v96_v11  ;;  %v104_v22 = vsel %vm103_vm3, %v102_v14, %v101_v13  ;;  %v122_v23 = vsel %vm121_vm4, %v89_v15, %v94_v16  ;;  %v111_v27 = vrot.slane %v84_v6, 2  ;;  %v324_v52 = vld [vmem:[#allocation5 + $0x50] sm:$0xff]  ;;  %v418_v56 = vld [vmem:[#allocation7 + $0x8] sm:$0xff]  ;;  %v421_v1 = vld [vmem:[#allocation8] sm:$0xff]  ;;  %s3222_s14 = smov 64   ;;  %s3223_s15 = smov 32  }
  0x51   :  { %v124_v25 = vsel %vm123_vm5, %v122_v23, %v99_v21  ;;  %v108_v26 = vsel %vm88_vm0, %v107_v18, %v106_v17  ;;  %v114_v28 = vrot.slane %v83_v5, 2  ;;  %v115_v30 = vrot.slane %v84_v6, 1  ;;  %v2406_v58 = vld [vmem:[%s3700_s2 + $0x1] ss:$0 sm:$0xff]  ;;  %v422_v2 = vld [vmem:[#allocation8 + $0x8] sm:$0xff]  ;;  %v424_v9 = vld [vmem:[#allocation8 + $0x18] sm:$0xff] }
  0x52   :  { %v126_v29 = vsel %vm125_vm6, %v124_v25, %v104_v22  ;;  %v118_v31 = vrot.slane %v83_v5, 1  ;;  %v2800_v32 = vpack.c.bf16 %v227_v20, %v226_v19  ;;  %2799 = vmatpush3.bf16.msra.mxu0 %v2796_v7  ;;  %v112_v33 = vsel %vm93_vm1, %v111_v27, %v110_v24  ;;  %v419_v4 = vld [vmem:[#allocation7 + $0x10] sm:$0xff]  ;;  %v420_v5 = vld [vmem:[#allocation7 + $0x18] sm:$0xff]  ;;  %s3225_s20 = smov [#allocation11]  }
  0x53   :  { %2569 = vmatprep.mubr.msk.f32.mxu0 %vm141_vm7, %v126_v29  ;;  %v116_v34 = vsel %vm98_vm2, %v115_v30, %v114_v28  ;;  %v127_v36 = vsel %vm121_vm4, %v108_v26, %v112_v33  ;;  %v2804_v41 = vpack.c.bf16 %v229_v40, %v228_v39  ;;  %v2808_v44 = vpack.c.bf16 %v323_v43, %v322_v42  ;;  %v423_v8 = vld [vmem:[#allocation8 + $0x10] sm:$0xff]  ;;  %s2382_s21 = sshll.u32 %s3225_s20, 4  ;;  %s2383_s21 = int_to_ptr.vmem [resolvable:$true] %s2382_s21 }
  0x54   :  { %v119_v35 = vsel %vm103_vm3, %v84_v6, %v118_v31  ;;  %2801 = vmatprep.subr.bf16.mxu1 %v2800_v32  ;;  %v128_v37 = vsel %vm123_vm5, %v127_v36, %v116_v34  ;;  %v2812_v54 = vpack.c.bf16 %v325_v53, %v324_v52  ;;  %v2816_v57 = vpack.c.bf16 %v418_v56, %v417_v55  ;;  %v2410_v12 = vld [vmem:[%s3700_s2 + $0x2] ss:$0 sm:$0xff]  ;;  %v2413_v21 = vld [vmem:[%s3703_s5] ss:$0 sm:$0xff]  ;;  %s3159_s22 = scalar_lea.vmem %s2383_s21, 64  ;;  %p3164_p5 = scmp.lt.s32.totalorder %s2383_s21, %s2383_s21 }
  0x55   :  { %2803 = vmatpush3.bf16.msra.mxu1 %v2800_v32  ;;  %v129_v38 = vsel %vm125_vm6, %v128_v37, %v119_v35  ;;  %2809 = vmatprep.subr.bf16.mxu0 %v2808_v44  ;;  %v3373_v3 = vpack.c.bf16 %v422_v2, %v421_v1  ;;  %v3219_v6 = vmov 0.0|0.0   ;;  %v2820_v7 = vpack.c.bf16 %v420_v5, %v419_v4  ;;  %p3160_p4 = scmp.ne.s32.totalorder %s2383_s21, %s3159_s22  ;;  %p3165_p6 = scmp.lt.s32.totalorder %s3159_s22, %s3159_s22 }
  0x56   :  { %2570 = vmatmul.mubr.msk.f32.vlgmr.msra.gmra.mrb[0].mxu0 %vm141_vm7, %v129_v38  ;;  %2805 = vmatprep.subr.bf16.mxu1 %v2804_v41  ;;  %v3378_v10 = vpack.c.bf16 %v424_v9, %v423_v8  ;;  %vm3220_vm8 = vmmov 0   ;;  %v3221_v11 = vmov 0.0   ;;  %vm2344_vm9 = vcmask 523264  }
  0x57   :  { %2811 = vmatpush3.bf16.msra.mxu0 %v2808_v44  ;;  %vm1359_vm10 = vcmask 261126   ;;  %vm2346_vm11 = vcmask 785408   ;;  %p3166_p7 = por %p3165_p6, %p3164_p5 }
  0x58   :  { %2813 = vmatprep.subr.bf16.mxu0 %v2812_v54 }
  0x59   :  { %2807 = vmatpush3.bf16.msra.mxu1 %v2804_v41  ;;  %p3167_p8 = pnand %p3166_p7, %p3160_p4 }
  0x5a   :  { %2817 = vmatprep.subr.bf16.mxu1 %v2816_v57 }
  0x5b   :  { %2815 = vmatpush3.bf16.msra.mxu0 %v2812_v54 }
  0x5c   :  { %2824 = vmatprep.subr.bf16.mxu0 %v3219_v6 }
 0x129   :  { %v2571_v46 = vpop.f32.mrb[0].mxu0 }
 0x12a   :  { %v220_v47 = vadd.f32 %v2571_v46, %v2402_v45  ;;  %v214_v48 = vpop.f32.mrb[1].mxu0 }
 0x12b   :  { %v215_v49 = vadd.f32 %v2402_v45, %v214_v48 }
 0x12c   :  { %v224_v51 = vmax.f32 %v220_v47, 0.0 }
 0x12d   :  { %v223_v50 = vmax.f32 %v215_v49, 0.0 }
 0x12f   :  { %2580 = vmatprep.mubr.msk.f32.mxu1 %vm141_vm7, %v223_v50 }
 0x130   :  { %2581 = vmatmul.mubr.msk.f32.vlgmr.msra.gmra.mrb[0].mxu1 %vm141_vm7, %v224_v51 }
 0x131   :  { %2819 = vmatpush3.bf16.msra.mxu1 %v2816_v57 }
 0x132   :  { %2821 = vmatprep.subr.bf16.mxu1 %v2820_v7 }
 0x135   :  { %2823 = vmatpush3.bf16.msra.mxu1 %v2820_v7 }
 0x136   :  { %2830 = vmatprep.subr.bf16.mxu1 %v3219_v6 }
 0x203   :  { %v2582_v59 = vpop.f32.mrb[0].mxu1 }
 0x204   :  { %v316_v60 = vadd.f32 %v2582_v59, %v2406_v58  ;;  %v310_v61 = vpop.f32.mrb[1].mxu1 }
 0x205   :  { %v311_v62 = vadd.f32 %v2406_v58, %v310_v61 }
 0x206   :  { %v320_v0 = vmax.f32 %v316_v60, 0.0 }
 0x207   :  { %v319_v63 = vmax.f32 %v311_v62, 0.0 }
 0x209   :  { %2591 = vmatprep.mubr.msk.f32.mxu0 %vm141_vm7, %v319_v63 }
 0x20a   :  { %2592 = vmatmul.mubr.msk.f32.vlgmr.msra.gmra.mrb[2].mxu0 %vm141_vm7, %v320_v0 }
 0x20b   :  { %2826 = vmatpush3.bf16.msra.mxu0 %v3373_v3  ;;  %2613 = vmatprep.mubr.msk.f32.mxu0 %vm3220_vm8, %v3221_v11 }
 0x20c   :  { %2827 = vmatprep.subr.bf16.mxu0 %v3219_v6 }
 0x20f   :  { %2829 = vmatpush3.bf16.msra.mxu0 %v3378_v10 }
 0x210   :  { %2836 = vmatprep.subr.bf16.mxu0 %v3219_v6 }
 0x212   :  { %2614 = vmatmul.mubr.f32.vlgmr.msra.gmra.mrb[4].mxu0 %v3221_v11 }
 0x213   :  { %2838 = vmatpush3.bf16.msra.mxu0 %v3373_v3  ;;  %2635 = vmatprep.mubr.msk.f32.mxu0 %vm3220_vm8, %v3221_v11 }
 0x214   :  { %2839 = vmatprep.subr.bf16.mxu0 %v3219_v6 }
 0x217   :  { %2841 = vmatpush3.bf16.msra.mxu0 %v3378_v10 }
 0x218   :  { %2848 = vmatprep.subr.bf16.mxu0 %v3219_v6 }
 0x2dd   :  { %v2593_v13 = vpop.f32.mrb[2].mxu0 }
 0x2de   :  { %v412_v14 = vadd.f32 %v2593_v13, %v2410_v12  ;;  %v406_v15 = vpop.f32.mrb[3].mxu0 }
 0x2df   :  { %v407_v16 = vadd.f32 %v2410_v12, %v406_v15 }
 0x2e0   :  { %v416_v18 = vmax.f32 %v412_v14, 0.0 }
 0x2e1   :  { %v415_v17 = vmax.f32 %v407_v16, 0.0 }
 0x2e3   :  { %2602 = vmatprep.mubr.msk.f32.mxu1 %vm141_vm7, %v415_v17 }
 0x2e4   :  { %2603 = vmatmul.mubr.msk.f32.vlgmr.msra.gmra.mrb[2].mxu1 %vm141_vm7, %v416_v18 }
 0x2e5   :  { %2832 = vmatpush3.bf16.msra.mxu1 %v3373_v3  ;;  %2624 = vmatprep.mubr.msk.f32.mxu1 %vm3220_vm8, %v3221_v11  ;;  %v582_v19 = vpop.f32.mrb[4].mxu0 }
 0x2e6   :  { %2833 = vmatprep.subr.bf16.mxu1 %v3219_v6  ;;  %v2615_v20 = vpop.f32.mrb[5].mxu0 }
 0x2e9   :  { %2835 = vmatpush3.bf16.msra.mxu1 %v3378_v10 }
 0x2ea   :  { %2842 = vmatprep.subr.bf16.mxu1 %v3219_v6 }
 0x3b7   :  { %v2604_v22 = vpop.f32.mrb[2].mxu1 }
 0x3b8   :  { %v3406_v23 = vadd.f32 %v2604_v22, %v2413_v21  ;;  %v504_v24 = vpop.f32.mrb[3].mxu1 }
 0x3b9   :  { %v3408_v25 = vadd.f32 %v2413_v21, %v504_v24 }
 0x3bb   :  { %v586_v26 = vadd.f32 %v582_v19, %v3408_v25 }
 0x3bd   :  { %2943 = vtanh.f32 %v586_v26  ;;  %v2416_v28 = vmul.f32 -1.442695, %v586_v26 }
 0x3bf   :  { %2945 = vpow2.f32 %v2416_v28 }
 0x3c7   :  { %v2944_v27 = vpop.eup %2943 }
 0x3c8   :  { %596 = vrot.lane.b32.xlu0 %v2944_v27, %s3222_s14 }
 0x3c9   :  { %v2946_v29 = vpop.eup %2945 }
 0x3ca   :  { %v590_v30 = vadd.f32 1.0, %v2946_v29 }
 0x3cc   :  { %2947 = vrcp.f32 %v590_v30 }
 0x3d6   :  { %v2948_v31 = vpop.eup %2947 }
 0x3d7   :  { %v594_v34 = vmul.f32 0.0, %v2948_v31 }
 0x43a   :  { %v597_v32 = vpop.permute.xlu0 %596 }
 0x43b   :  { %v599_v33 = vmul.f32 %v2948_v31, %v597_v32 }
 0x43d   :  { %601 = vrot.lane.b32.xlu0 %v599_v33, %s3223_s15 }
 0x4af   :  { %v602_v35 = vpop.permute.xlu0 %601 }
 0x4b0   :  { %v604_v36 = vadd.f32 %v602_v35, %v594_v34 }
 0x4b2   :  { %2949 = vtanh.f32 %v604_v36  ;;  %v698_v52 = vrot.slane %v604_v36, 6 }
 0x4bc   :  { %v2950_v37 = vpop.eup %2949 }
 0x4bd   :  { %607 = vrot.lane.b32.xlu1 %v2950_v37, %s3222_s14 }
 0x52f   :  { %v608_v38 = vpop.permute.xlu1 %607 }
 0x530   :  { %v3414_v39 = vmul.f32 %v2948_v31, %v608_v38 }
 0x532   :  { %612 = vrot.lane.b32.xlu1 %v3414_v39, %s3223_s15 }
 0x5a4   :  { %v613_v40 = vpop.permute.xlu1 %612 }
 0x5a5   :  { %2625 = vmatmul.mubr.msk.f32.vlgmr.msra.gmra.mrb[4].mxu1 %vm141_vm7, %v613_v40 }
 0x5a6   :  { %2844 = vmatpush3.bf16.msra.mxu1 %v3373_v3  ;;  %2646 = vmatprep.mubr.msk.f32.mxu1 %vm3220_vm8, %v3221_v11 }
 0x5a7   :  { %2845 = vmatprep.subr.bf16.mxu1 %v3219_v6 }
 0x5aa   :  { %2847 = vmatpush3.bf16.msra.mxu1 %v3378_v10 }
 0x5ab   :  { %2854 = vmatprep.subr.bf16.mxu1 %v3219_v6 }
 0x678   :  { %v682_v41 = vpop.f32.mrb[4].mxu1 }
 0x679   :  { %v687_v42 = vrot.slane %v682_v41, 6  ;;  %v2626_v43 = vpop.f32.mrb[5].mxu1 }
 0x67b   :  { %v689_v44 = vadd.f32 %v687_v42, %v3408_v25 }
 0x67d   :  { %2951 = vtanh.f32 %v689_v44  ;;  %v2418_v46 = vmul.f32 -1.442695, %v689_v44 }
 0x67f   :  { %2953 = vpow2.f32 %v2418_v46 }
 0x687   :  { %v2952_v45 = vpop.eup %2951 }
 0x688   :  { %702 = vrot.lane.b32.xlu0 %v2952_v45, %s3222_s14 }
 0x689   :  { %v2954_v47 = vpop.eup %2953 }
 0x68a   :  { %v693_v48 = vadd.f32 1.0, %v2954_v47 }
 0x68c   :  { %2955 = vrcp.f32 %v693_v48 }
 0x696   :  { %v2956_v49 = vpop.eup %2955 }
 0x697   :  { %v700_v53 = vmul.f32 %v2956_v49, %v698_v52 }
 0x6fa   :  { %v703_v50 = vpop.permute.xlu0 %702 }
 0x6fb   :  { %v705_v51 = vmul.f32 %v2956_v49, %v703_v50 }
 0x6fd   :  { %707 = vrot.lane.b32.xlu1 %v705_v51, %s3223_s15 }
 0x76f   :  { %v708_v54 = vpop.permute.xlu1 %707 }
 0x770   :  { %v710_v55 = vadd.f32 %v708_v54, %v700_v53 }
 0x772   :  { %2957 = vtanh.f32 %v710_v55  ;;  %v805_v12 = vrot.slane %v710_v55, 6 }
 0x77c   :  { %v2958_v56 = vpop.eup %2957 }
 0x77d   :  { %713 = vrot.lane.b32.xlu0 %v2958_v56, %s3222_s14 }
 0x7ef   :  { %v714_v57 = vpop.permute.xlu0 %713 }
 0x7f0   :  { %v716_v58 = vmul.f32 %v2956_v49, %v714_v57 }
 0x7f2   :  { %v718_v59 = vrot.slane %v716_v58, 2  ;;  %v1366_v19 = vsel %vm121_vm4, %v3414_v39, %v716_v58 }
 0x7f4   :  { %719 = vrot.lane.b32.xlu1 %v718_v59, %s3223_s15 }
 0x866   :  { %v720_v60 = vpop.permute.xlu1 %719 }
 0x867   :  { %2636 = vmatmul.mubr.msk.f32.vlgmr.msra.gmra.mrb[6].mxu0 %vm141_vm7, %v720_v60 }
 0x868   :  { %2850 = vmatpush3.bf16.msra.mxu0 %v3373_v3  ;;  %2657 = vmatprep.mubr.msk.f32.mxu0 %vm3220_vm8, %v3221_v11 }
 0x869   :  { %2851 = vmatprep.subr.bf16.mxu0 %v3219_v6 }
 0x86c   :  { %2853 = vmatpush3.bf16.msra.mxu0 %v3378_v10 }
 0x86d   :  { %2860 = vmatprep.subr.bf16.mxu0 %v3219_v6 }
 0x93a   :  { %v789_v61 = vpop.f32.mrb[6].mxu0 }
 0x93b   :  { %v794_v62 = vrot.slane %v789_v61, 4  ;;  %v2637_v63 = vpop.f32.mrb[7].mxu0 }
 0x93d   :  { %v796_v0 = vadd.f32 %v794_v62, %v3408_v25 }
 0x93f   :  { %2959 = vtanh.f32 %v796_v0  ;;  %v2420_v2 = vmul.f32 -1.442695, %v796_v0 }
 0x941   :  { %2961 = vpow2.f32 %v2420_v2 }
 0x949   :  { %v2960_v1 = vpop.eup %2959 }
 0x94a   :  { %809 = vrot.lane.b32.xlu0 %v2960_v1, %s3222_s14 }
 0x94b   :  { %v2962_v4 = vpop.eup %2961 }
 0x94c   :  { %v800_v5 = vadd.f32 1.0, %v2962_v4 }
 0x94e   :  { %2963 = vrcp.f32 %v800_v5 }
 0x958   :  { %v2964_v7 = vpop.eup %2963 }
 0x959   :  { %v807_v13 = vmul.f32 %v2964_v7, %v805_v12 }
 0x9bc   :  { %v810_v8 = vpop.permute.xlu0 %809 }
 0x9bd   :  { %v812_v9 = vmul.f32 %v2964_v7, %v810_v8 }
 0x9bf   :  { %814 = vrot.lane.b32.xlu1 %v812_v9, %s3223_s15 }
 0xa31   :  { %v815_v14 = vpop.permute.xlu1 %814 }
 0xa32   :  { %v817_v15 = vadd.f32 %v815_v14, %v807_v13 }
 0xa34   :  { %2965 = vtanh.f32 %v817_v15  ;;  %v912_v36 = vrot.slane %v817_v15, 6 }
 0xa3e   :  { %v2966_v16 = vpop.eup %2965 }
 0xa3f   :  { %820 = vrot.lane.b32.xlu0 %v2966_v16, %s3222_s14 }
 0xab1   :  { %v821_v17 = vpop.permute.xlu0 %820 }
 0xab2   :  { %v823_v18 = vmul.f32 %v2964_v7, %v821_v17 }
 0xab4   :  { %v825_v20 = vrot.slane %v823_v18, 4  ;;  %v1367_v21 = vsel %vm123_vm5, %v1366_v19, %v823_v18 }
 0xab6   :  { %826 = vrot.lane.b32.xlu1 %v825_v20, %s3223_s15 }
 0xb28   :  { %v827_v22 = vpop.permute.xlu1 %826 }
 0xb29   :  { %2647 = vmatmul.mubr.msk.f32.vlgmr.msra.gmra.mrb[6].mxu1 %vm141_vm7, %v827_v22 }
 0xb2a   :  { %2856 = vmatpush3.bf16.msra.mxu1 %v3373_v3  ;;  %2668 = vmatprep.mubr.msk.f32.mxu1 %vm3220_vm8, %v3221_v11 }
 0xb2b   :  { %2857 = vmatprep.subr.bf16.mxu1 %v3219_v6 }
 0xb2e   :  { %2859 = vmatpush3.bf16.msra.mxu1 %v3378_v10 }
 0xb2f   :  { %2866 = vmatprep.subr.bf16.mxu1 %v3219_v6 }
 0xbfc   :  { %v896_v24 = vpop.f32.mrb[6].mxu1 }
 0xbfd   :  { %v901_v26 = vrot.slane %v896_v24, 2  ;;  %v2648_v27 = vpop.f32.mrb[7].mxu1 }
 0xbff   :  { %v903_v28 = vadd.f32 %v901_v26, %v3408_v25 }
 0xc01   :  { %2967 = vtanh.f32 %v903_v28  ;;  %v2422_v30 = vmul.f32 -1.442695, %v903_v28 }
 0xc03   :  { %2969 = vpow2.f32 %v2422_v30 }
 0xc0b   :  { %v2968_v29 = vpop.eup %2967 }
 0xc0c   :  { %916 = vrot.lane.b32.xlu0 %v2968_v29, %s3222_s14 }
 0xc0d   :  { %v2970_v31 = vpop.eup %2969 }
 0xc0e   :  { %v907_v32 = vadd.f32 1.0, %v2970_v31 }
 0xc10   :  { %2971 = vrcp.f32 %v907_v32 }
 0xc1a   :  { %v2972_v33 = vpop.eup %2971 }
 0xc1b   :  { %v914_v37 = vmul.f32 %v2972_v33, %v912_v36 }
 0xc7e   :  { %v917_v34 = vpop.permute.xlu0 %916 }
 0xc7f   :  { %v919_v35 = vmul.f32 %v2972_v33, %v917_v34 }
 0xc81   :  { %921 = vrot.lane.b32.xlu1 %v919_v35, %s3223_s15 }
 0xcf3   :  { %v922_v38 = vpop.permute.xlu1 %921 }
 0xcf4   :  { %v924_v39 = vadd.f32 %v922_v38, %v914_v37 }
 0xcf6   :  { %2973 = vtanh.f32 %v924_v39  ;;  %v1016_v55 = vrot.slane %v924_v39, 6 }
 0xd00   :  { %v2974_v25 = vpop.eup %2973 }
 0xd01   :  { %927 = vrot.lane.b32.xlu0 %v2974_v25, %s3222_s14 }
 0xd73   :  { %v928_v40 = vpop.permute.xlu0 %927 }
 0xd74   :  { %v930_v41 = vmul.f32 %v2972_v33, %v928_v40 }
 0xd76   :  { %v932_v42 = vrot.slane %v930_v41, 6  ;;  %v3457_v43 = vsel %vm125_vm6, %v1367_v21, %v930_v41 }
 0xd78   :  { %933 = vrot.lane.b32.xlu1 %v932_v42, %s3223_s15 }
 0xdea   :  { %v934_v44 = vpop.permute.xlu1 %933 }
 0xdeb   :  { %2658 = vmatmul.mubr.msk.f32.vlgmr.msra.gmra.mrb[8].mxu0 %vm141_vm7, %v934_v44 }
 0xdec   :  { %2862 = vmatpush3.bf16.msra.mxu0 %v3373_v3  ;;  %2679 = vmatprep.mubr.msk.f32.mxu0 %vm3220_vm8, %v3221_v11 }
 0xded   :  { %2863 = vmatprep.subr.bf16.mxu0 %v3219_v6 }
 0xdf0   :  { %2865 = vmatpush3.bf16.msra.mxu0 %v3378_v10 }
 0xebe   :  { %v1003_v45 = vpop.f32.mrb[8].mxu0 }
 0xebf   :  { %v1007_v46 = vadd.f32 %v1003_v45, %v3406_v23  ;;  %v2659_v47 = vpop.f32.mrb[9].mxu0 }
 0xec1   :  { %2975 = vtanh.f32 %v1007_v46  ;;  %v2424_v49 = vmul.f32 -1.442695, %v1007_v46 }
 0xec3   :  { %2977 = vpow2.f32 %v2424_v49 }
 0xecb   :  { %v2976_v48 = vpop.eup %2975 }
 0xecc   :  { %1020 = vrot.lane.b32.xlu0 %v2976_v48, %s3222_s14 }
 0xecd   :  { %v2978_v50 = vpop.eup %2977 }
 0xece   :  { %v1011_v51 = vadd.f32 1.0, %v2978_v50 }
 0xed0   :  { %2979 = vrcp.f32 %v1011_v51 }
 0xeda   :  { %v2980_v52 = vpop.eup %2979 }
 0xedb   :  { %v1018_v56 = vmul.f32 %v2980_v52, %v1016_v55 }
 0xf3e   :  { %v1021_v53 = vpop.permute.xlu0 %1020 }
 0xf3f   :  { %v1023_v54 = vmul.f32 %v2980_v52, %v1021_v53 }
 0xf41   :  { %1025 = vrot.lane.b32.xlu1 %v1023_v54, %s3223_s15 }
 0xfb3   :  { %v1026_v57 = vpop.permute.xlu1 %1025 }
 0xfb4   :  { %v1028_v58 = vadd.f32 %v1026_v57, %v1018_v56 }
 0xfb6   :  { %2981 = vtanh.f32 %v1028_v58 }
 0xfc0   :  { %v2982_v59 = vpop.eup %2981 }
 0xfc1   :  { %1031 = vrot.lane.b32.xlu0 %v2982_v59, %s3222_s14 }
0x1033   :  { %v1032_v60 = vpop.permute.xlu0 %1031 }
0x1034   :  { %v3470_v61 = vmul.f32 %v2980_v52, %v1032_v60  ;;  %v1373_v60 = vld [vmem:[#allocation7 + $0x20] sm:$0xff] }
0x1036   :  { %1036 = vrot.lane.b32.xlu1 %v3470_v61, %s3223_s15 }
0x10a8   :  { %v1037_v62 = vpop.permute.xlu1 %1036 }
0x10a9   :  { %2669 = vmatmul.mubr.msk.f32.vlgmr.msra.gmra.mrb[8].mxu1 %vm141_vm7, %v1037_v62  ;;  %v1378_v62 = vld [vmem:[#allocation8 + $0x20] sm:$0xff] }
0x10aa   :  { %2868 = vmatpush3.bf16.msra.mxu1 %v3373_v3  ;;  %2690 = vmatprep.mubr.msk.f32.mxu1 %vm3220_vm8, %v3221_v11 }
0x10ab   :  { %2869 = vmatprep.subr.bf16.mxu1 %v3219_v6 }
0x10ae   :  { %2871 = vmatpush3.bf16.msra.mxu1 %v3378_v10  ;;  %v1122_v10 = vrot.slane %v1028_v58, 6 }
0x10af   :  { %2880 = vmatprep.subr.bf16.mxu1 %v3219_v6 }
0x117c   :  { %v1106_v63 = vpop.f32.mrb[8].mxu1 }
0x117d   :  { %v1111_v0 = vrot.slane %v1106_v63, 6  ;;  %v2670_v1 = vpop.f32.mrb[9].mxu1 }
0x117e   :  { %v1375_v1 = vld [vmem:[#allocation7 + $0x30] sm:$0xff] }
0x117f   :  { %v1113_v2 = vadd.f32 %v1111_v0, %v3406_v23  ;;  %v1379_v0 = vld [vmem:[#allocation8 + $0x28] sm:$0xff] }
0x1181   :  { %2983 = vtanh.f32 %v1113_v2  ;;  %v2426_v5 = vmul.f32 -1.442695, %v1113_v2  ;;  %v1376_v2 = vld [vmem:[#allocation7 + $0x38] sm:$0xff] }
0x1183   :  { %2985 = vpow2.f32 %v2426_v5  ;;  %v1380_v5 = vld [vmem:[#allocation8 + $0x30] sm:$0xff] }
0x118b   :  { %v2984_v4 = vpop.eup %2983 }
0x118c   :  { %1126 = vrot.lane.b32.xlu0 %v2984_v4, %s3222_s14  ;;  %v3507_v4 = vpack.c.bf16 %v1379_v0, %v1378_v62 }
0x118d   :  { %v2986_v3 = vpop.eup %2985 }
0x118e   :  { %v1117_v7 = vadd.f32 1.0, %v2986_v3  ;;  %v1381_v3 = vld [vmem:[#allocation8 + $0x38] sm:$0xff] }
0x1190   :  { %2987 = vrcp.f32 %v1117_v7  ;;  %v3510_v7 = vpack.c.bf16 %v1381_v3, %v1380_v5 }
0x119a   :  { %v2988_v8 = vpop.eup %2987 }
0x119b   :  { %v1124_v13 = vmul.f32 %v2988_v8, %v1122_v10 }
0x11fe   :  { %v1127_v9 = vpop.permute.xlu0 %1126 }
0x11ff   :  { %v1129_v12 = vmul.f32 %v2988_v8, %v1127_v9 }
0x1201   :  { %1131 = vrot.lane.b32.xlu1 %v1129_v12, %s3223_s15 }
0x1273   :  { %v1132_v14 = vpop.permute.xlu1 %1131 }
0x1274   :  { %v1134_v15 = vadd.f32 %v1132_v14, %v1124_v13 }
0x1276   :  { %2989 = vtanh.f32 %v1134_v15  ;;  %v1229_v34 = vrot.slane %v1134_v15, 6 }
0x1280   :  { %v2990_v16 = vpop.eup %2989 }
0x1281   :  { %1137 = vrot.lane.b32.xlu0 %v2990_v16, %s3222_s14  ;;  %v2432_v16 = vld [vmem:[%s3703_s5 + $0x1] ss:$0 sm:$0xff]  ;;  %s3224_s5 = smov 96  }
0x12f3   :  { %v1138_v17 = vpop.permute.xlu0 %1137 }
0x12f4   :  { %v1140_v18 = vmul.f32 %v2988_v8, %v1138_v17 }
0x12f6   :  { %v1142_v19 = vrot.slane %v1140_v18, 2  ;;  %v1369_v40 = vsel %vm121_vm4, %v3470_v61, %v1140_v18  ;;  %v1374_v61 = vld [vmem:[#allocation7 + $0x28] sm:$0xff] }
0x12f7   :  { %v2872_v63 = vpack.c.bf16 %v1374_v61, %v1373_v60 }
0x12f8   :  { %1143 = vrot.lane.b32.xlu1 %v1142_v19, %s3223_s15 }
0x12f9   :  { %2873 = vmatprep.subr.bf16.mxu0 %v2872_v63 }
0x136a   :  { %v1144_v20 = vpop.permute.xlu1 %1143 }
0x136b   :  { %2680 = vmatmul.mubr.msk.f32.vlgmr.msra.gmra.mrb[10].mxu0 %vm141_vm7, %v1144_v20 }
0x136c   :  { %2875 = vmatpush3.bf16.msra.mxu0 %v2872_v63 }
0x143e   :  { %v1213_v21 = vpop.f32.mrb[10].mxu0 }
0x143f   :  { %v1218_v22 = vrot.slane %v1213_v21, 4  ;;  %v2681_v24 = vpop.f32.mrb[11].mxu0 }
0x1441   :  { %v1220_v26 = vadd.f32 %v1218_v22, %v3406_v23 }
0x1443   :  { %2991 = vtanh.f32 %v1220_v26  ;;  %v2428_v28 = vmul.f32 -1.442695, %v1220_v26 }
0x1445   :  { %2993 = vpow2.f32 %v2428_v28 }
0x144d   :  { %v2992_v27 = vpop.eup %2991 }
0x144e   :  { %1233 = vrot.lane.b32.xlu0 %v2992_v27, %s3222_s14 }
0x144f   :  { %v2994_v29 = vpop.eup %2993 }
0x1450   :  { %v1224_v30 = vadd.f32 1.0, %v2994_v29 }
0x1452   :  { %2995 = vrcp.f32 %v1224_v30 }
0x145c   :  { %v2996_v31 = vpop.eup %2995 }
0x145d   :  { %v1231_v35 = vmul.f32 %v2996_v31, %v1229_v34 }
0x14c0   :  { %v1234_v32 = vpop.permute.xlu0 %1233 }
0x14c1   :  { %v1236_v33 = vmul.f32 %v2996_v31, %v1234_v32 }
0x14c3   :  { %1238 = vrot.lane.b32.xlu1 %v1236_v33, %s3223_s15 }
0x1535   :  { %v1239_v36 = vpop.permute.xlu1 %1238 }
0x1536   :  { %v1241_v37 = vadd.f32 %v1239_v36, %v1231_v35 }
0x1538   :  { %2997 = vtanh.f32 %v1241_v37  ;;  %v1336_v56 = vrot.slane %v1241_v37, 6 }
0x1542   :  { %v2998_v38 = vpop.eup %2997 }
0x1543   :  { %1244 = vrot.lane.b32.xlu0 %v2998_v38, %s3222_s14 }
0x15b5   :  { %v1245_v39 = vpop.permute.xlu0 %1244 }
0x15b6   :  { %v1247_v25 = vmul.f32 %v2996_v31, %v1245_v39 }
0x15b8   :  { %v1249_v41 = vrot.slane %v1247_v25, 4  ;;  %v1370_v42 = vsel %vm123_vm5, %v1369_v40, %v1247_v25 }
0x15ba   :  { %1250 = vrot.lane.b32.xlu1 %v1249_v41, %s3223_s15 }
0x162c   :  { %v1251_v44 = vpop.permute.xlu1 %1250 }
0x162d   :  { %2691 = vmatmul.mubr.msk.f32.vlgmr.msra.gmra.mrb[10].mxu1 %vm141_vm7, %v1251_v44 }
0x162e   :  { %2712 = vmatprep.mubr.msk.f32.mxu1 %vm3220_vm8, %v3221_v11  ;;  %2882 = vmatpush3.bf16.msra.mxu1 %v3507_v4 }
0x162f   :  { %2883 = vmatprep.subr.bf16.mxu1 %v3219_v6 }
0x1632   :  { %2885 = vmatpush3.bf16.msra.mxu1 %v3510_v7 }
0x1633   :  { %2892 = vmatprep.subr.bf16.mxu1 %v3219_v6 }
0x1635   :  { %2713 = vmatmul.mubr.f32.vlgmr.msra.gmra.mrb[12].mxu1 %v3221_v11 }
0x1636   :  { %2894 = vmatpush3.bf16.msra.mxu1 %v3507_v4  ;;  %2734 = vmatprep.mubr.msk.f32.mxu1 %vm3220_vm8, %v3221_v11 }
0x1637   :  { %2895 = vmatprep.subr.bf16.mxu1 %v3219_v6 }
0x163a   :  { %2897 = vmatpush3.bf16.msra.mxu1 %v3510_v7 }
0x163b   :  { %2904 = vmatprep.subr.bf16.mxu1 %v3219_v6 }
0x1700   :  { %v1320_v45 = vpop.f32.mrb[10].mxu1 }
0x1701   :  { %v1325_v46 = vrot.slane %v1320_v45, 2  ;;  %v2692_v47 = vpop.f32.mrb[11].mxu1 }
0x1703   :  { %v1327_v48 = vadd.f32 %v1325_v46, %v3406_v23 }
0x1705   :  { %2999 = vtanh.f32 %v1327_v48  ;;  %v2430_v50 = vmul.f32 -1.442695, %v1327_v48 }
0x1707   :  { %3001 = vpow2.f32 %v2430_v50 }
0x1708   :  { %v1541_v14 = vpop.f32.mrb[12].mxu1 }
0x1709   :  { %v2714_v15 = vpop.f32.mrb[13].mxu1 }
0x170f   :  { %v3000_v49 = vpop.eup %2999 }
0x1710   :  { %1340 = vrot.lane.b32.xlu0 %v3000_v49, %s3222_s14 }
0x1711   :  { %v3002_v51 = vpop.eup %3001 }
0x1712   :  { %v1331_v52 = vadd.f32 1.0, %v3002_v51 }
0x1714   :  { %3003 = vrcp.f32 %v1331_v52 }
0x171e   :  { %v3004_v53 = vpop.eup %3003 }
0x171f   :  { %v1338_v57 = vmul.f32 %v3004_v53, %v1336_v56 }
0x1782   :  { %v1341_v54 = vpop.permute.xlu0 %1340 }
0x1783   :  { %v1343_v55 = vmul.f32 %v3004_v53, %v1341_v54 }
0x1785   :  { %1345 = vrot.lane.b32.xlu1 %v1343_v55, %s3223_s15 }
0x1789   :  { %1392 = vrot.lane.b32.xlu1 %v3457_v43, %s3223_s15  ;;  %v2876_v43 = vpack.c.bf16 %v1376_v2, %v1375_v1 }
0x178b   :  { %2877 = vmatprep.subr.bf16.mxu0 %v2876_v43 }
0x178c   :  { %2879 = vmatpush3.bf16.msra.mxu0 %v2876_v43 }
0x178d   :  { %2886 = vmatprep.subr.bf16.mxu0 %v3219_v6 }
0x17f7   :  { %v1346_v23 = vpop.permute.xlu1 %1345 }
0x17f8   :  { %v3503_v58 = vadd.f32 %v1346_v23, %v1338_v57 }
0x17fa   :  { %3005 = vtanh.f32 %v3503_v58 }
0x17fb   :  { %v1393_v59 = vpop.permute.xlu1 %1392 }
0x17fc   :  { %2701 = vmatprep.mubr.msk.f32.mxu0 %vm141_vm7, %v1393_v59 }
0x1804   :  { %v3006_v8 = vpop.eup %3005 }
0x1805   :  { %1351 = vrot.lane.b32.xlu0 %v3006_v8, %s3222_s14 }
0x1877   :  { %v1352_v9 = vpop.permute.xlu0 %1351 }
0x1878   :  { %v3524_v12 = vmul.f32 %v3004_v53, %v1352_v9 }
0x187a   :  { %v1371_v10 = vsel %vm125_vm6, %v1370_v42, %v3524_v12 }
0x187b   :  { %1394 = vrot.lane.b32.xlu0 %v1371_v10, %s3223_s15 }
0x18ed   :  { %v1395_v13 = vpop.permute.xlu0 %1394 }
0x18ee   :  { %2702 = vmatmul.mubr.msk.f32.vlgmr.msra.gmra.mrb[12].mxu0 %vm141_vm7, %v1395_v13 }
0x18ef   :  { %2888 = vmatpush3.bf16.msra.mxu0 %v3507_v4  ;;  %2723 = vmatprep.mubr.msk.f32.mxu0 %vm3220_vm8, %v3221_v11 }
0x18f0   :  { %2889 = vmatprep.subr.bf16.mxu0 %v3219_v6 }
0x18f3   :  { %2891 = vmatpush3.bf16.msra.mxu0 %v3510_v7 }
0x18f4   :  { %2898 = vmatprep.subr.bf16.mxu0 %v3219_v6 }
0x19c1   :  { %v2703_v17 = vpop.f32.mrb[12].mxu0 }
0x19c2   :  { %v3539_v18 = vadd.f32 %v2703_v17, %v2432_v16  ;;  %v1466_v19 = vpop.f32.mrb[13].mxu0 }
0x19c3   :  { %v3541_v20 = vadd.f32 %v2432_v16, %v1466_v19 }
0x19c5   :  { %v1545_v21 = vadd.f32 %v1541_v14, %v3541_v20 }
0x19c7   :  { %3007 = vtanh.f32 %v1545_v21  ;;  %v2435_v24 = vmul.f32 -1.442695, %v1545_v21 }
0x19c9   :  { %3009 = vpow2.f32 %v2435_v24 }
0x19d1   :  { %v3008_v22 = vpop.eup %3007 }
0x19d2   :  { %1555 = vrot.lane.b32.xlu1 %v3008_v22, %s3222_s14 }
0x19d3   :  { %v3010_v26 = vpop.eup %3009 }
0x19d4   :  { %v1549_v27 = vadd.f32 1.0, %v3010_v26 }
0x19d6   :  { %3011 = vrcp.f32 %v1549_v27 }
0x19e0   :  { %v3012_v28 = vpop.eup %3011 }
0x19e1   :  { %v1553_v31 = vmul.f32 0.0, %v3012_v28 }
0x1a44   :  { %v1556_v29 = vpop.permute.xlu1 %1555 }
0x1a45   :  { %v1558_v30 = vmul.f32 %v3012_v28, %v1556_v29 }
0x1a47   :  { %1560 = vrot.lane.b32.xlu0 %v1558_v30, %s3223_s15 }
0x1ab9   :  { %v1561_v32 = vpop.permute.xlu0 %1560 }
0x1aba   :  { %v1563_v33 = vadd.f32 %v1561_v32, %v1553_v31 }
0x1abc   :  { %3013 = vtanh.f32 %v1563_v33  ;;  %v1657_v49 = vrot.slane %v1563_v33, 6 }
0x1ac6   :  { %v3014_v34 = vpop.eup %3013 }
0x1ac7   :  { %1566 = vrot.lane.b32.xlu1 %v3014_v34, %s3222_s14 }
0x1b39   :  { %v1567_v35 = vpop.permute.xlu1 %1566 }
0x1b3a   :  { %v1569_v36 = vmul.f32 %v3012_v28, %v1567_v35 }
0x1b3c   :  { %1571 = vrot.lane.b32.xlu0 %v1569_v36, %s3223_s15 }
0x1bae   :  { %v3548_v37 = vpop.permute.xlu0 %1571 }
0x1baf   :  { %2724 = vmatmul.mubr.msk.f32.vlgmr.msra.gmra.mrb[14].mxu0 %vm141_vm7, %v3548_v37 }
0x1bb0   :  { %2900 = vmatpush3.bf16.msra.mxu0 %v3507_v4  ;;  %2745 = vmatprep.mubr.msk.f32.mxu0 %vm3220_vm8, %v3221_v11 }
0x1bb1   :  { %2901 = vmatprep.subr.bf16.mxu0 %v3219_v6 }
0x1bb4   :  { %2903 = vmatpush3.bf16.msra.mxu0 %v3510_v7 }
0x1bb5   :  { %2910 = vmatprep.subr.bf16.mxu0 %v3219_v6 }
0x1c82   :  { %v1641_v38 = vpop.f32.mrb[14].mxu0 }
0x1c83   :  { %v1646_v39 = vrot.slane %v1641_v38, 6  ;;  %v2725_v25 = vpop.f32.mrb[15].mxu0 }
0x1c85   :  { %v1648_v40 = vadd.f32 %v1646_v39, %v3541_v20 }
0x1c87   :  { %3015 = vtanh.f32 %v1648_v40  ;;  %v2437_v42 = vmul.f32 -1.442695, %v1648_v40 }
0x1c89   :  { %3017 = vpow2.f32 %v2437_v42 }
0x1c91   :  { %v3016_v41 = vpop.eup %3015 }
0x1c92   :  { %1661 = vrot.lane.b32.xlu1 %v3016_v41, %s3222_s14 }
0x1c93   :  { %v3018_v44 = vpop.eup %3017 }
0x1c94   :  { %v1652_v45 = vadd.f32 1.0, %v3018_v44 }
0x1c96   :  { %3019 = vrcp.f32 %v1652_v45 }
0x1ca0   :  { %v3020_v46 = vpop.eup %3019 }
0x1ca1   :  { %v1659_v50 = vmul.f32 %v3020_v46, %v1657_v49 }
0x1d04   :  { %v1662_v47 = vpop.permute.xlu1 %1661 }
0x1d05   :  { %v1664_v48 = vmul.f32 %v3020_v46, %v1662_v47 }
0x1d07   :  { %1666 = vrot.lane.b32.xlu0 %v1664_v48, %s3223_s15 }
0x1d79   :  { %v1667_v51 = vpop.permute.xlu0 %1666 }
0x1d7a   :  { %v1669_v52 = vadd.f32 %v1667_v51, %v1659_v50 }
0x1d7c   :  { %3021 = vtanh.f32 %v1669_v52  ;;  %v1764_v3 = vrot.slane %v1669_v52, 6 }
0x1d86   :  { %v3022_v53 = vpop.eup %3021 }
0x1d87   :  { %1672 = vrot.lane.b32.xlu1 %v3022_v53, %s3222_s14 }
0x1df9   :  { %v1673_v54 = vpop.permute.xlu1 %1672 }
0x1dfa   :  { %v3562_v55 = vmul.f32 %v3020_v46, %v1673_v54 }
0x1dfc   :  { %v1677_v56 = vrot.slane %v3562_v55, 2 }
0x1dfe   :  { %1678 = vrot.lane.b32.xlu0 %v1677_v56, %s3223_s15 }
0x1e70   :  { %v1679_v57 = vpop.permute.xlu0 %1678 }
0x1e71   :  { %2735 = vmatmul.mubr.msk.f32.vlgmr.msra.gmra.mrb[14].mxu1 %vm141_vm7, %v1679_v57 }
0x1e72   :  { %2906 = vmatpush3.bf16.msra.mxu1 %v3507_v4  ;;  %2756 = vmatprep.mubr.msk.f32.mxu1 %vm3220_vm8, %v3221_v11 }
0x1e73   :  { %2907 = vmatprep.subr.bf16.mxu1 %v3219_v6 }
0x1e76   :  { %2909 = vmatpush3.bf16.msra.mxu1 %v3510_v7 }
0x1e77   :  { %2916 = vmatprep.subr.bf16.mxu1 %v3219_v6 }
0x1f44   :  { %v1748_v23 = vpop.f32.mrb[14].mxu1 }
0x1f45   :  { %v1753_v59 = vrot.slane %v1748_v23, 4  ;;  %v2736_v60 = vpop.f32.mrb[15].mxu1 }
0x1f47   :  { %v1755_v61 = vadd.f32 %v1753_v59, %v3541_v20 }
0x1f49   :  { %3023 = vtanh.f32 %v1755_v61  ;;  %v2439_v63 = vmul.f32 -1.442695, %v1755_v61 }
0x1f4b   :  { %3025 = vpow2.f32 %v2439_v63 }
0x1f53   :  { %v3024_v62 = vpop.eup %3023 }
0x1f54   :  { %1768 = vrot.lane.b32.xlu1 %v3024_v62, %s3222_s14 }
0x1f55   :  { %v3026_v0 = vpop.eup %3025 }
0x1f56   :  { %v1759_v1 = vadd.f32 1.0, %v3026_v0 }
0x1f58   :  { %3027 = vrcp.f32 %v1759_v1 }
0x1f62   :  { %v3028_v2 = vpop.eup %3027 }
0x1f63   :  { %v1766_v8 = vmul.f32 %v3028_v2, %v1764_v3 }
0x1fc6   :  { %v1769_v43 = vpop.permute.xlu1 %1768 }
0x1fc7   :  { %v1771_v5 = vmul.f32 %v3028_v2, %v1769_v43 }
0x1fc9   :  { %1773 = vrot.lane.b32.xlu0 %v1771_v5, %s3223_s15 }
0x203b   :  { %v1774_v9 = vpop.permute.xlu0 %1773 }
0x203c   :  { %v1776_v10 = vadd.f32 %v1774_v9, %v1766_v8 }
0x203e   :  { %3029 = vtanh.f32 %v1776_v10  ;;  %v1871_v33 = vrot.slane %v1776_v10, 6 }
0x2048   :  { %v3030_v13 = vpop.eup %3029 }
0x2049   :  { %1779 = vrot.lane.b32.xlu1 %v3030_v13, %s3222_s14 }
0x20bb   :  { %v1780_v14 = vpop.permute.xlu1 %1779 }
0x20bc   :  { %v3579_v15 = vmul.f32 %v3028_v2, %v1780_v14 }
0x20be   :  { %v1784_v16 = vrot.slane %v3579_v15, 4 }
0x20c0   :  { %1785 = vrot.lane.b32.xlu0 %v1784_v16, %s3223_s15 }
0x2132   :  { %v1786_v17 = vpop.permute.xlu0 %1785 }
0x2133   :  { %2746 = vmatmul.mubr.msk.f32.vlgmr.msra.gmra.mrb[16].mxu0 %vm141_vm7, %v1786_v17 }
0x2134   :  { %2912 = vmatpush3.bf16.msra.mxu0 %v3507_v4  ;;  %2767 = vmatprep.mubr.msk.f32.mxu0 %vm3220_vm8, %v3221_v11 }
0x2135   :  { %2913 = vmatprep.subr.bf16.mxu0 %v3219_v6 }
0x2138   :  { %2915 = vmatpush3.bf16.msra.mxu0 %v3510_v7 }
0x2139   :  { %2922 = vmatprep.subr.bf16.mxu0 %v3219_v6 }
0x2206   :  { %v1855_v19 = vpop.f32.mrb[16].mxu0 }
0x2207   :  { %v1860_v21 = vrot.slane %v1855_v19, 2  ;;  %v2747_v22 = vpop.f32.mrb[17].mxu0 }
0x2209   :  { %v1862_v24 = vadd.f32 %v1860_v21, %v3541_v20 }
0x220b   :  { %3031 = vtanh.f32 %v1862_v24  ;;  %v2441_v27 = vmul.f32 -1.442695, %v1862_v24 }
0x220d   :  { %3033 = vpow2.f32 %v2441_v27 }
0x2215   :  { %v3032_v26 = vpop.eup %3031 }
0x2216   :  { %1875 = vrot.lane.b32.xlu1 %v3032_v26, %s3222_s14 }
0x2217   :  { %v3034_v28 = vpop.eup %3033 }
0x2218   :  { %v1866_v29 = vadd.f32 1.0, %v3034_v28 }
0x221a   :  { %3035 = vrcp.f32 %v1866_v29 }
0x2224   :  { %v3036_v30 = vpop.eup %3035 }
0x2225   :  { %v1873_v34 = vmul.f32 %v3036_v30, %v1871_v33 }
0x2288   :  { %v1876_v31 = vpop.permute.xlu1 %1875 }
0x2289   :  { %v1878_v32 = vmul.f32 %v3036_v30, %v1876_v31 }
0x228b   :  { %1880 = vrot.lane.b32.xlu0 %v1878_v32, %s3223_s15 }
0x22fd   :  { %v1881_v35 = vpop.permute.xlu0 %1880 }
0x22fe   :  { %v1883_v36 = vadd.f32 %v1881_v35, %v1873_v34 }
0x2300   :  { %3037 = vtanh.f32 %v1883_v36  ;;  %v1975_v52 = vrot.slane %v1883_v36, 6 }
0x230a   :  { %v3038_v20 = vpop.eup %3037 }
0x230b   :  { %1886 = vrot.lane.b32.xlu1 %v3038_v20, %s3222_s14 }
0x237d   :  { %v1887_v38 = vpop.permute.xlu1 %1886 }
0x237e   :  { %v3596_v39 = vmul.f32 %v3036_v30, %v1887_v38 }
0x2380   :  { %v1891_v25 = vrot.slane %v3596_v39, 6 }
0x2382   :  { %1892 = vrot.lane.b32.xlu0 %v1891_v25, %s3223_s15 }
0x23f4   :  { %v1893_v40 = vpop.permute.xlu0 %1892 }
0x23f5   :  { %2757 = vmatmul.mubr.msk.f32.vlgmr.msra.gmra.mrb[16].mxu1 %vm141_vm7, %v1893_v40 }
0x23f6   :  { %2918 = vmatpush3.bf16.msra.mxu1 %v3507_v4  ;;  %2778 = vmatprep.mubr.msk.f32.mxu1 %vm3220_vm8, %v3221_v11 }
0x23f7   :  { %2919 = vmatprep.subr.bf16.mxu1 %v3219_v6 }
0x23fa   :  { %2921 = vmatpush3.bf16.msra.mxu1 %v3510_v7 }
0x24c8   :  { %v1962_v41 = vpop.f32.mrb[16].mxu1 }
0x24c9   :  { %v1966_v42 = vadd.f32 %v1962_v41, %v3539_v18  ;;  %v2758_v44 = vpop.f32.mrb[17].mxu1 }
0x24cb   :  { %3039 = vtanh.f32 %v1966_v42  ;;  %v2443_v46 = vmul.f32 -1.442695, %v1966_v42 }
0x24cd   :  { %3041 = vpow2.f32 %v2443_v46 }
0x24d5   :  { %v3040_v45 = vpop.eup %3039 }
0x24d6   :  { %1979 = vrot.lane.b32.xlu1 %v3040_v45, %s3222_s14 }
0x24d7   :  { %v3042_v47 = vpop.eup %3041 }
0x24d8   :  { %v1970_v48 = vadd.f32 1.0, %v3042_v47 }
0x24da   :  { %3043 = vrcp.f32 %v1970_v48 }
0x24e4   :  { %v3044_v49 = vpop.eup %3043 }
0x24e5   :  { %v1977_v53 = vmul.f32 %v3044_v49, %v1975_v52 }
0x2548   :  { %v1980_v50 = vpop.permute.xlu1 %1979 }
0x2549   :  { %v1982_v51 = vmul.f32 %v3044_v49, %v1980_v50 }
0x254b   :  { %1984 = vrot.lane.b32.xlu0 %v1982_v51, %s3223_s15 }
0x25bd   :  { %v1985_v54 = vpop.permute.xlu0 %1984 }
0x25be   :  { %v1987_v57 = vadd.f32 %v1985_v54, %v1977_v53 }
0x25c0   :  { %3045 = vtanh.f32 %v1987_v57 }
0x25ca   :  { %v3046_v23 = vpop.eup %3045 }
0x25cb   :  { %1990 = vrot.lane.b32.xlu1 %v3046_v23, %s3222_s14 }
0x263d   :  { %v1991_v59 = vpop.permute.xlu1 %1990 }
0x263e   :  { %v1993_v60 = vmul.f32 %v3044_v49, %v1991_v59 }
0x2640   :  { %1995 = vrot.lane.b32.xlu0 %v1993_v60, %s3223_s15 }
0x26b2   :  { %v3613_v61 = vpop.permute.xlu0 %1995 }
0x26b3   :  { %2768 = vmatmul.mubr.msk.f32.vlgmr.msra.gmra.mrb[18].mxu0 %vm141_vm7, %v3613_v61 }
0x26b4   :  { %2924 = vmatpush3.bf16.msra.mxu0 %v3507_v4  ;;  %2789 = vmatprep.mubr.msk.f32.mxu0 %vm3220_vm8, %v3221_v11 }
0x26b5   :  { %2925 = vmatprep.subr.bf16.mxu0 %v3219_v6  ;;  %v2081_v6 = vrot.slane %v1987_v57, 6 }
0x26b8   :  { %2927 = vmatpush3.bf16.msra.mxu0 %v3510_v7 }
0x2786   :  { %v2065_v62 = vpop.f32.mrb[18].mxu0 }
0x2787   :  { %v2070_v63 = vrot.slane %v2065_v62, 6  ;;  %v2769_v0 = vpop.f32.mrb[19].mxu0 }
0x2789   :  { %v2072_v1 = vadd.f32 %v2070_v63, %v3539_v18 }
0x278b   :  { %3047 = vtanh.f32 %v2072_v1  ;;  %v2445_v43 = vmul.f32 -1.442695, %v2072_v1 }
0x278d   :  { %3049 = vpow2.f32 %v2445_v43 }
0x2795   :  { %v3048_v2 = vpop.eup %3047 }
0x2796   :  { %2085 = vrot.lane.b32.xlu1 %v3048_v2, %s3222_s14 }
0x2797   :  { %v3050_v5 = vpop.eup %3049 }
0x2798   :  { %v2076_v4 = vadd.f32 1.0, %v3050_v5 }
0x279a   :  { %3051 = vrcp.f32 %v2076_v4 }
0x27a4   :  { %v3052_v3 = vpop.eup %3051 }
0x27a5   :  { %v2083_v7 = vmul.f32 %v3052_v3, %v2081_v6 }
0x2808   :  { %v2086_v11 = vpop.permute.xlu1 %2085 }
0x2809   :  { %v2088_v8 = vmul.f32 %v3052_v3, %v2086_v11 }
0x280b   :  { %2090 = vrot.lane.b32.xlu0 %v2088_v8, %s3223_s15 }
0x287d   :  { %v2091_v9 = vpop.permute.xlu0 %2090 }
0x287e   :  { %v2093_v10 = vadd.f32 %v2091_v9, %v2083_v7 }
0x2880   :  { %3053 = vtanh.f32 %v2093_v10  ;;  %v2188_v35 = vrot.slane %v2093_v10, 6 }
0x288a   :  { %v3054_v13 = vpop.eup %3053 }
0x288b   :  { %2096 = vrot.lane.b32.xlu1 %v3054_v13, %s3222_s14 }
0x28fd   :  { %v2097_v14 = vpop.permute.xlu1 %2096 }
0x28fe   :  { %v3626_v17 = vmul.f32 %v3052_v3, %v2097_v14 }
0x2900   :  { %v2101_v19 = vrot.slane %v3626_v17, 2 }
0x2902   :  { %2102 = vrot.lane.b32.xlu0 %v2101_v19, %s3223_s15 }
0x2974   :  { %v2103_v21 = vpop.permute.xlu0 %2102 }
0x2975   :  { %2779 = vmatmul.mubr.msk.f32.vlgmr.msra.gmra.mrb[18].mxu1 %vm141_vm7, %v2103_v21 }
0x2a48   :  { %v2172_v22 = vpop.f32.mrb[18].mxu1 }
0x2a49   :  { %v2177_v24 = vrot.slane %v2172_v22, 4  ;;  %v2780_v26 = vpop.f32.mrb[19].mxu1 }
0x2a4b   :  { %v2179_v27 = vadd.f32 %v2177_v24, %v3539_v18 }
0x2a4d   :  { %3055 = vtanh.f32 %v2179_v27  ;;  %v2447_v29 = vmul.f32 -1.442695, %v2179_v27 }
0x2a4f   :  { %3057 = vpow2.f32 %v2447_v29 }
0x2a57   :  { %v3056_v28 = vpop.eup %3055 }
0x2a58   :  { %2192 = vrot.lane.b32.xlu1 %v3056_v28, %s3222_s14 }
0x2a59   :  { %v3058_v30 = vpop.eup %3057 }
0x2a5a   :  { %v2183_v31 = vadd.f32 1.0, %v3058_v30 }
0x2a5c   :  { %3059 = vrcp.f32 %v2183_v31 }
0x2a66   :  { %v3060_v32 = vpop.eup %3059 }
0x2a67   :  { %v2190_v36 = vmul.f32 %v3060_v32, %v2188_v35 }
0x2aca   :  { %v2193_v33 = vpop.permute.xlu1 %2192 }
0x2acb   :  { %v2195_v34 = vmul.f32 %v3060_v32, %v2193_v33 }
0x2acd   :  { %2197 = vrot.lane.b32.xlu0 %v2195_v34, %s3223_s15 }
0x2b3f   :  { %v2198_v20 = vpop.permute.xlu0 %2197 }
0x2b40   :  { %v2200_v38 = vadd.f32 %v2198_v20, %v2190_v36 }
0x2b42   :  { %3061 = vtanh.f32 %v2200_v38 }
0x2b4c   :  { %v3062_v40 = vpop.eup %3061 }
0x2b4d   :  { %2203 = vrot.lane.b32.xlu1 %v3062_v40, %s3222_s14 }
0x2bbf   :  { %v2204_v41 = vpop.permute.xlu1 %2203 }
0x2bc0   :  { %v2206_v42 = vmul.f32 %v3060_v32, %v2204_v41 }
0x2bc2   :  { %v2208_v44 = vrot.slane %v2206_v42, 4 }
0x2bc4   :  { %2209 = vrot.lane.b32.xlu0 %v2208_v44, %s3223_s15 }
0x2c36   :  { %v2210_v45 = vpop.permute.xlu0 %2209 }
0x2c37   :  { %2790 = vmatmul.mubr.msk.f32.vlgmr.msra.gmra.mrb[20].mxu0 %vm141_vm7, %v2210_v45 }
0x2d0a   :  { %v2279_v46 = vpop.f32.mrb[20].mxu0 }
0x2d0b   :  { %v2284_v47 = vrot.slane %v2279_v46, 2  ;;  %v2791_v48 = vpop.f32.mrb[21].mxu0 }
0x2d0d   :  { %v2286_v49 = vadd.f32 %v2284_v47, %v3539_v18  ;;  %v2295_v18 = vrot.slane %v2200_v38, 6 }
0x2d0f   :  { %3063 = vtanh.f32 %v2286_v49  ;;  %v2449_v51 = vmul.f32 -1.442695, %v2286_v49 }
0x2d11   :  { %3065 = vpow2.f32 %v2449_v51 }
0x2d19   :  { %v3064_v50 = vpop.eup %3063 }
0x2d1a   :  { %2299 = vrot.lane.b32.xlu1 %v3064_v50, %s3222_s14 }
0x2d1b   :  { %v3066_v52 = vpop.eup %3065 }
0x2d1c   :  { %v2290_v53 = vadd.f32 1.0, %v3066_v52 }
0x2d1e   :  { %3067 = vrcp.f32 %v2290_v53 }
0x2d28   :  { %v3068_v54 = vpop.eup %3067 }
0x2d29   :  { %v2297_v59 = vmul.f32 %v3068_v54, %v2295_v18 }
0x2d8c   :  { %v2300_v57 = vpop.permute.xlu1 %2299 }
0x2d8d   :  { %v2302_v23 = vmul.f32 %v3068_v54, %v2300_v57 }
0x2d8f   :  { %2304 = vrot.lane.b32.xlu0 %v2302_v23, %s3223_s15 }
0x2d93   :  { %2327 = vrot.lane.b32.xlu0 %v1677_v56, %s3222_s14 }
0x2d97   :  { %2330 = vrot.lane.b32.xlu0 %v1784_v16, %s3224_s5 }
0x2d9b   :  { %1356 = vrot.lane.b32.xlu0 %v3524_v12, %s3223_s15 }
0x2e01   :  { %v2305_v60 = vpop.permute.xlu0 %2304 }
0x2e02   :  { %v2307_v62 = vadd.f32 %v2305_v60, %v2297_v59 }
0x2e04   :  { %3069 = vtanh.f32 %v2307_v62 }
0x2e05   :  { %v2328_v63 = vpop.permute.xlu0 %2327 }
0x2e06   :  { %v2343_v0 = vsel %vm141_vm7, %v3548_v37, %v2328_v63 }
0x2e09   :  { %v2331_v1 = vpop.permute.xlu0 %2330 }
0x2e0a   :  { %v2345_v55 = vsel %vm2344_vm9, %v2343_v0, %v2331_v1 }
0x2e0b   :  { %v2347_v3 = vsel %vm2346_vm11, %v2345_v55, %v1891_v25 }
0x2e0d   :  { %v1357_v56 = vpop.permute.xlu0 %1356 }
0x2e0e   :  { %v3070_v15 = vpop.eup %3069  ;;  %1360 = vst.msk [vmem:[#allocation10 - $0x6] sm:$0xc0] %vm1359_vm10, %v1357_v56 }
0x2e0f   :  { %2310 = vrot.lane.b32.xlu1 %v3070_v15, %s3222_s14 }
0x2e13   :  { %2335 = vrot.lane.b32.xlu1 %v2101_v19, %s3222_s14 }
0x2e17   :  { %2338 = vrot.lane.b32.xlu1 %v2208_v44, %s3224_s5 }
0x2e1b   :  { %1362 = vrot.lane.b32.xlu1 %v3503_v58, %s3224_s5 }
0x2e1f   :  { %2321 = vrot.lane.b32.xlu1 %v2307_v62, %s3224_s5 }
0x2e81   :  { %v2311_v12 = vpop.permute.xlu1 %2310 }
0x2e82   :  { %v2313_v37 = vmul.f32 %v3068_v54, %v2311_v12 }
0x2e84   :  { %2315 = vrot.lane.b32.xlu0 %v2313_v37, %s3223_s15  ;;  %v2341_v2 = vrot.slane %v2313_v37, 6 }
0x2e85   :  { %v2336_v16 = vpop.permute.xlu1 %2335 }
0x2e86   :  { %v2348_v43 = vsel %vm141_vm7, %v3613_v61, %v2336_v16 }
0x2e89   :  { %v2339_v5 = vpop.permute.xlu1 %2338 }
0x2e8a   :  { %v2349_v4 = vsel %vm2344_vm9, %v2348_v43, %v2339_v5 }
0x2e8b   :  { %v2350_v11 = vsel %vm2346_vm11, %v2349_v4, %v2341_v2 }
0x2e8c   :  { %v2353_v8 = vcombine.low %v2347_v3, %v2350_v11 }
0x2e8d   :  { %v1363_v58 = vpop.permute.xlu1 %1362 }
0x2e8e   :  { %2450 = vst.sshfl [vmem:[%s3704_s6] sm:$0x33 pattern:$0x76325410] %v2353_v8  ;;  %1365 = vst.msk [vmem:[#allocation11 - $0x6] sm:$0xc0] %vm1359_vm10, %v1363_v58 }
0x2e91   :  { %v2322_v6 = vpop.permute.xlu1 %2321 }
0x2e92   :  { %2325 = vst.msk [vmem:[#allocation11 - $0x4] sm:$0xc0] %vm1359_vm10, %v2322_v6 }
0x2e93   :  { %3170 = shalt.err (!%p3167_p8)
}
0x2e94   :  { %s3171_s25 = scalar_lea.hbm %s3706_s8, 64 }
0x2e95   :  { %p3172_p9 = scmp.ne.s32.totalorder %s3706_s8, %s3171_s25  ;;  %p3175_p10 = scmp.lt.u32.totalorder %s3171_s25, %s3706_s8 }
0x2e97   :  { %p3177_p11 = pnand %p3175_p10, %p3172_p9 }
0x2e99   :  { %3180 = shalt.err (!%p3177_p11)
}
0x2e9a   :  { %s3226_s1 = smov 2   ;;  %s3227_s9 = smov [#allocation10]  }
0x2e9b   :  { %2388 = dma.vmem_to_hbm [thread:$0]  %s2383_s21, 64, %s3706_s8, [#allocation12], %s3223_s15, %s3223_s15, %s3226_s1  }
0x2e9c   :  { %s2370_s4 = sshll.u32 %s3227_s9, 4  ;;  %s2371_s4 = int_to_ptr.vmem [resolvable:$true] %s2370_s4 }
0x2e9d   :  { %s3181_s17 = scalar_lea.vmem %s2371_s4, 64  ;;  %p3186_p13 = scmp.lt.s32.totalorder %s2371_s4, %s2371_s4 }
0x2e9e   :  { %p3182_p12 = scmp.ne.s32.totalorder %s2371_s4, %s3181_s17  ;;  %p3187_p0 = scmp.lt.s32.totalorder %s3181_s17, %s3181_s17 }
0x2ea0   :  { %p3188_p1 = por %p3187_p0, %p3186_p13 }
0x2ea2   :  { %p3189_p2 = pnand %p3188_p1, %p3182_p12 }
0x2ef6   :  { %v2316_v39 = vpop.permute.xlu0 %2315 }
0x2ef7   :  { %2319 = vst.msk [vmem:[#allocation10 - $0x4] sm:$0xc0] %vm1359_vm10, %v2316_v39 }
0x2ef8   :  { %3192 = shalt.err (!%p3189_p2)
}
0x2ef9   :  { %s3193_s11 = scalar_lea.hbm %s3705_s7, 64 }
0x2efa   :  { %p3194_p3 = scmp.ne.s32.totalorder %s3705_s7, %s3193_s11  ;;  %p3197_p4 = scmp.lt.u32.totalorder %s3193_s11, %s3705_s7 }
0x2efc   :  { %p3199_p5 = pnand %p3197_p4, %p3194_p3 }
0x2efe   :  { %3202 = shalt.err (!%p3199_p5)
}
0x2eff   :  { %2376 = dma.vmem_to_hbm [thread:$0]  %s2371_s4, 64, %s3705_s7, [#allocation4], %s3223_s15, %s3223_s15, %s3226_s1  }
0x2f00   :  { %3209 = dma.done.wait [#allocation4], 64  }
0x2f01   :  { %3210 = vsyncadd [#allocation4], 4294967232 }
0x2f02   :  { %3211 = dma.done.wait [#allocation12], 64  }
0x2f03   :  { %3212 = vsyncadd [#allocation12], 4294967232 }
0x2f04   :  { %2397 = vsyncpa [#allocation3], 1 }
0x2f05   :  { %2398 = vsyncpa [#allocation6], 1 }
0x2f06   :  { %2399 = vsyncpa [#allocation9], 1 }
0x2f07   :  { %2400 = vsyncpa [#allocation4], 1 }
0x2f08   :  { %2401 = vsyncpa [#allocation12], 1 }

</bundles_post_ra>
